<compile_context>
chip_gen: v7x
topology: tpu7x:2x2x1
jax: 0.10.0
libtpu: 0.0.40
codegen_flags: <defaults>
</compile_context>

<pallas_src>
import functools

import jax
import jax.numpy as jnp
from jax.experimental import pallas as pl
from jax.experimental.pallas import tpu as pltpu

# ----------------------------- config ---------------------------------------
# Scaled-down analogue of XLM-R-large (1024 hidden / 24 layers / 16 heads).
B = 2            # batch
S = 8            # sequence length
H = 32           # hidden size        (stands in for 1024)
NH = 4           # attention heads    (stands in for 16)
HD = H // NH     # head dim
I = 64           # intermediate size  (stands in for 4096)
L = 2            # encoder layers     (stands in for 24)
VOCAB = 64
MAX_POS = 32
TYPE_VOCAB = 2
NUM_LABELS = 23
PAD_IDX = 1      # XLM-R padding_idx
EPS = 1e-5
LANE = 128       # lane-dense output width for the classifier head

F32 = jnp.float32
BF16 = jnp.bfloat16


# ----------------------------- helpers (in-kernel) --------------------------
def _layernorm(x, g, b):
    mu = jnp.mean(x, axis=-1, keepdims=True)
    var = jnp.mean((x - mu) ** 2, axis=-1, keepdims=True)
    return (x - mu) * jax.lax.rsqrt(var + EPS) * g + b


def _gelu(x):
    # TODO(synk): HF XLM-R uses erf-based "gelu"; tanh approximation used here.
    c = jnp.sqrt(2.0 / jnp.pi).astype(x.dtype)
    return 0.5 * x * (1.0 + jnp.tanh(c * (x + 0.044715 * x * x * x)))


# ----------------------------- fused kernel ---------------------------------
def fused_xlmr_kernel(
        x_emb_ref, mask_ref, emb_g_ref, emb_b_ref,
        wqkv_ref, bqkv_ref, wo_ref, bo_ref,
        ln1g_ref, ln1b_ref, wi_ref, bi_ref, wf_ref, bf_ref, ln2g_ref, ln2b_ref,
        wp_ref, bp_ref, wc_ref, bc_ref,
        logits_ref, x_scratch, *, num_heads):
    l = pl.program_id(0)
    hb, _, s = mask_ref.shape            # [NH*B, 1, S] additive mask bias
    bsz = hb // num_heads
    bs, h = x_scratch.shape              # [B*S, H] activation carried in VMEM
    hd = h // num_heads

    # ---- step 0: embedding LayerNorm (folded in) ----------------------------
    @pl.when(l == 0)
    def _():
        x_scratch[...] = _layernorm(x_emb_ref[...], emb_g_ref[...], emb_b_ref[...])

    x = x_scratch[...]                   # [B*S, H] f32
    xb = x.astype(BF16)

    def dense(inp_bf16, w_ref, b_ref):   # single 2-D MXU pass, bf16 in / f32 acc
        return jnp.dot(inp_bf16, w_ref[...],
                       preferred_element_type=jnp.float32) + b_ref[...]

    # ---- self attention ------------------------------------------------------
    # Fused QKV projection: one [B*S, H] @ [H, 3H] matmul.  The softmax scale
    # 1/sqrt(hd) is pre-folded into the Q slice of wqkv/bqkv at init time.
    qkv = dense(xb, wqkv_ref, bqkv_ref)              # [B*S, 3H] f32
    q, k, v = qkv[:, :h], qkv[:, h:2 * h], qkv[:, 2 * h:]

    def split_heads(t):                  # [B*S, H] -> [NH*B, S, HD], batch = head*B + b
        t_h = jnp.stack([t[:, i * hd:(i + 1) * hd] for i in range(num_heads)],
                        axis=0)                       # [NH, B*S, HD]
        return t_h.reshape(num_heads * bsz, s, hd)    # lane dim unchanged

    qh = split_heads(q).astype(BF16)
    kh = split_heads(k).astype(BF16)
    vh = split_heads(v).astype(BF16)

    # single head-batched einsum pair; mask is pre-tiled to [NH*B, 1, S]
    sc = jnp.einsum('bqd,bkd->bqk', qh, kh,
                    preferred_element_type=jnp.float32) + mask_ref[...]
    m = jnp.max(sc, axis=-1, keepdims=True)
    p = jnp.exp(sc - m)
    p = p * pl.reciprocal(jnp.sum(p, axis=-1, keepdims=True), approx=True)
    ctx_h = jnp.einsum('bqk,bkd->bqd', p.astype(BF16), vh,
                       preferred_element_type=jnp.float32)   # [NH*B, S, HD]
    ctx_h = ctx_h.reshape(num_heads, bs, hd)                 # [NH, B*S, HD]
    ctx = jnp.concatenate([ctx_h[i] for i in range(num_heads)],
                          axis=-1)                           # [B*S, H]

    attn = dense(ctx.astype(BF16), wo_ref, bo_ref)
    h1 = _layernorm(x + attn, ln1g_ref[...], ln1b_ref[...])

    # ---- feed forward --------------------------------------------------------
    ff = _gelu(dense(h1.astype(BF16), wi_ref, bi_ref))
    ff = dense(ff.astype(BF16), wf_ref, bf_ref)
    out = _layernorm(h1 + ff, ln2g_ref[...], ln2b_ref[...])
    x_scratch[...] = out

    # ---- last step: pooler (tanh on CLS) + dropout(identity) + classifier ----
    @pl.when(l == pl.num_programs(0) - 1)
    def _():
        # TODO(synk): torch.nn.Dropout(0.3) modeled as eval-mode identity.
        cls = out.reshape(bsz, s, h)[:, 0, :]        # [B, H]
        pooled = jnp.tanh(dense(cls.astype(BF16), wp_ref, bp_ref))
        logits_ref[...] = dense(pooled.astype(BF16), wc_ref, bc_ref)  # [B, 128]


# ----------------------------- pallas_call wrapper ---------------------------
def _shared_spec(x):
    # Constant block index across the grid -> single buffer is enough
    # (double buffering these only doubles their VMEM footprint).
    nd = x.ndim
    return pl.BlockSpec(x.shape, lambda l, _nd=nd: (0,) * _nd,
                        pipeline_mode=pl.Buffered(1))


def _layer_spec(x):                     # stacked per-layer param [L, a, b]
    return pl.BlockSpec((None,) + tuple(x.shape[1:]), lambda l: (l, 0, 0))


_LAYER_PARAM_NAMES = ('wqkv', 'bqkv', 'wo', 'bo',
                      'ln1g', 'ln1b', 'wi', 'bi', 'wf', 'bf', 'ln2g', 'ln2b')


def fused_forward(x_emb2d, mask_bias_heads, params):
    shared_in = (x_emb2d, mask_bias_heads, params['emb_ln_g'], params['emb_ln_b'])
    layer_in = tuple(params[n] for n in _LAYER_PARAM_NAMES)
    head_in = (params['wp'], params['bp'], params['wc_pad'], params['bc_pad'])
    args = shared_in + layer_in + head_in

    in_specs = ([_shared_spec(a) for a in shared_in]
                + [_layer_spec(a) for a in layer_in]
                + [_shared_spec(a) for a in head_in])

    kernel = functools.partial(fused_xlmr_kernel, num_heads=NH)
    return pl.pallas_call(
        kernel,
        out_shape=jax.ShapeDtypeStruct((B, LANE), F32),
        grid_spec=pltpu.PrefetchScalarGridSpec(
            num_scalar_prefetch=0,
            grid=(L,),                                   # layers are sequential
            in_specs=in_specs,
            out_specs=pl.BlockSpec((B, LANE), lambda l: (0, 0)),
            scratch_shapes=[pltpu.VMEM((B * S, H), F32)]),
        compiler_params=pltpu.CompilerParams(
            dimension_semantics=("arbitrary",),
            # leave headroom on v7x (64 MiB/TC physical); plenty at toy shapes
            vmem_limit_bytes=48 * 1024 * 1024),
    )(*args)


# ----------------------------- parameter init --------------------------------
def init_params(key):
    def nrm(k, shape, scale=0.02):
        return (scale * jax.random.normal(k, shape)).astype(F32)

    keys = iter(jax.random.split(key, 32))

    # fused QKV weight [L, H, 3H]; softmax scale folded into the Q slice
    q_scale = 1.0 / (HD ** 0.5)
    wq = nrm(next(keys), (L, H, H)) * q_scale
    wk = nrm(next(keys), (L, H, H))
    wv = nrm(next(keys), (L, H, H))
    wqkv = jnp.concatenate([wq, wk, wv], axis=-1).astype(BF16)   # [L, H, 3H]
    bqkv = jnp.zeros((L, 1, 3 * H), F32)                          # Q slice pre-scaled too

    p = {
        'word_emb': nrm(next(keys), (VOCAB, H)),
        'pos_emb': nrm(next(keys), (MAX_POS, H)),
        'tok_emb': nrm(next(keys), (TYPE_VOCAB, H)),
        'emb_ln_g': jnp.ones((1, H), F32),
        'emb_ln_b': jnp.zeros((1, H), F32),
        # stacked per-layer encoder params ([L, ...]); matmul weights in bf16
        'wqkv': wqkv,
        'bqkv': bqkv,
        'wo': nrm(next(keys), (L, H, H)).astype(BF16),
        'bo': jnp.zeros((L, 1, H), F32),
        'ln1g': jnp.ones((L, 1, H), F32),
        'ln1b': jnp.zeros((L, 1, H), F32),
        'wi': nrm(next(keys), (L, H, I)).astype(BF16),
        'bi': jnp.zeros((L, 1, I), F32),
        'wf': nrm(next(keys), (L, I, H)).astype(BF16),
        'bf': jnp.zeros((L, 1, H), F32),
        'ln2g': jnp.ones((L, 1, H), F32),
        'ln2b': jnp.zeros((L, 1, H), F32),
        # pooler + classifier head
        'wp': nrm(next(keys), (H, H)).astype(BF16),     # pooler dense
        'bp': jnp.zeros((1, H), F32),
    }
    wc = nrm(next(keys), (H, NUM_LABELS))               # Linear(1024, 23) analogue
    bc = jnp.zeros((1, NUM_LABELS), F32)
    # lane-dense (128-wide) classifier weights; logits sliced back to 23 outside
    p['wc_pad'] = jnp.zeros((H, LANE), F32).at[:, :NUM_LABELS].set(wc).astype(BF16)
    p['bc_pad'] = jnp.zeros((1, LANE), F32).at[:, :NUM_LABELS].set(bc)
    return p


# ----------------------------- forward ---------------------------------------
def forward(params, ids, mask, token_type_ids):
    # --- plain-JAX glue: embedding gathers + XLM-R position ids ---
    not_pad = (ids != PAD_IDX).astype(jnp.int32)
    pos_ids = jnp.cumsum(not_pad, axis=1) * not_pad + PAD_IDX   # XLM-R convention
    x_sum = (params['word_emb'][ids]
             + params['pos_emb'][pos_ids]
             + params['tok_emb'][token_type_ids]).astype(F32)    # [B, S, H]
    x2 = x_sum.reshape(B * S, H)

    # additive attention bias, pre-tiled over heads to [NH*B, 1, S]
    # (merged batch index in-kernel is head*B + b)
    mask_bias = ((1.0 - mask.astype(F32)) * -1e9).reshape(B, 1, S)
    mask_bias_heads = jnp.broadcast_to(mask_bias[None], (NH, B, 1, S)
                                       ).reshape(NH * B, 1, S)

    # --- single fused Pallas call: emb LN + L encoder layers + pooler + cls ---
    logits_pad = fused_forward(x2, mask_bias_heads, params)     # [B, 128]
    return logits_pad[:, :NUM_LABELS]


# ----------------------------- main -------------------------------------------
if __name__ == "__main__":
    key = jax.random.PRNGKey(0)
    kp, ki = jax.random.split(key)

    params = init_params(kp)

    ids = jax.random.randint(ki, (B, S), minval=2, maxval=VOCAB, dtype=jnp.int32)
    ids = ids.at[:, 0].set(0)          # CLS-like token
    mask = jnp.ones((B, S), dtype=jnp.int32)
    mask = mask.at[1, S - 2:].set(0)   # pad tail of second example
    ids = ids.at[1, S - 2:].set(PAD_IDX)
    token_type_ids = jnp.zeros((B, S), dtype=jnp.int32)

    logits = forward(params, ids, mask, token_type_ids)
    jax.block_until_ready(logits)
    assert logits.shape == (B, NUM_LABELS)
    print("KERNEL_OK")
</pallas_src>

<mosaic_0001>
module attributes {stable_mosaic.version = 11 : i64} {
  func.func @fused_xlmr_kernel(%arg0: i32, %arg1: memref<16x32xf32, #tpu.memory_space<vmem>>, %arg2: memref<8x1x8xf32, #tpu.memory_space<vmem>>, %arg3: memref<1x32xf32, #tpu.memory_space<vmem>>, %arg4: memref<1x32xf32, #tpu.memory_space<vmem>>, %arg5: memref<1x32x96xbf16, #tpu.memory_space<vmem>>, %arg6: memref<1x1x96xf32, #tpu.memory_space<vmem>>, %arg7: memref<1x32x32xbf16, #tpu.memory_space<vmem>>, %arg8: memref<1x1x32xf32, #tpu.memory_space<vmem>>, %arg9: memref<1x1x32xf32, #tpu.memory_space<vmem>>, %arg10: memref<1x1x32xf32, #tpu.memory_space<vmem>>, %arg11: memref<1x32x64xbf16, #tpu.memory_space<vmem>>, %arg12: memref<1x1x64xf32, #tpu.memory_space<vmem>>, %arg13: memref<1x64x32xbf16, #tpu.memory_space<vmem>>, %arg14: memref<1x1x32xf32, #tpu.memory_space<vmem>>, %arg15: memref<1x1x32xf32, #tpu.memory_space<vmem>>, %arg16: memref<1x1x32xf32, #tpu.memory_space<vmem>>, %arg17: memref<32x32xbf16, #tpu.memory_space<vmem>>, %arg18: memref<1x32xf32, #tpu.memory_space<vmem>>, %arg19: memref<32x128xbf16, #tpu.memory_space<vmem>>, %arg20: memref<1x128xf32, #tpu.memory_space<vmem>>, %arg21: memref<2x128xf32, #tpu.memory_space<vmem>>, %arg22: memref<16x32xf32, #tpu.memory_space<vmem>>) attributes {dimension_semantics = [#tpu.dimension_semantics<arbitrary>], iteration_bounds = array<i64: 2>, scalar_prefetch = 0 : i64, scratch_operands = 1 : i64, tpu.core_type = #tpu.core_type<tc>, window_params = [{pipeline_mode = #tpu.pipeline_mode<synchronous>, transform_indices = @transform_0, window_bounds = array<i64: 16, 32>}, {pipeline_mode = #tpu.pipeline_mode<synchronous>, transform_indices = @transform_1, window_bounds = array<i64: 8, 1, 8>}, {pipeline_mode = #tpu.pipeline_mode<synchronous>, transform_indices = @transform_2, window_bounds = array<i64: 1, 32>}, {pipeline_mode = #tpu.pipeline_mode<synchronous>, transform_indices = @transform_3, window_bounds = array<i64: 1, 32>}, {transform_indices = @transform_4, window_bounds = array<i64: 1, 32, 96>}, {transform_indices = @transform_5, window_bounds = array<i64: 1, 1, 96>}, {transform_indices = @transform_6, window_bounds = array<i64: 1, 32, 32>}, {transform_indices = @transform_7, window_bounds = array<i64: 1, 1, 32>}, {transform_indices = @transform_8, window_bounds = array<i64: 1, 1, 32>}, {transform_indices = @transform_9, window_bounds = array<i64: 1, 1, 32>}, {transform_indices = @transform_10, window_bounds = array<i64: 1, 32, 64>}, {transform_indices = @transform_11, window_bounds = array<i64: 1, 1, 64>}, {transform_indices = @transform_12, window_bounds = array<i64: 1, 64, 32>}, {transform_indices = @transform_13, window_bounds = array<i64: 1, 1, 32>}, {transform_indices = @transform_14, window_bounds = array<i64: 1, 1, 32>}, {transform_indices = @transform_15, window_bounds = array<i64: 1, 1, 32>}, {pipeline_mode = #tpu.pipeline_mode<synchronous>, transform_indices = @transform_16, window_bounds = array<i64: 32, 32>}, {pipeline_mode = #tpu.pipeline_mode<synchronous>, transform_indices = @transform_17, window_bounds = array<i64: 1, 32>}, {pipeline_mode = #tpu.pipeline_mode<synchronous>, transform_indices = @transform_18, window_bounds = array<i64: 32, 128>}, {pipeline_mode = #tpu.pipeline_mode<synchronous>, transform_indices = @transform_19, window_bounds = array<i64: 1, 128>}, {pipeline_mode = #tpu.pipeline_mode<synchronous>, transform_indices = @transform_20, window_bounds = array<i64: 2, 128>}]} {
    %c0_i32 = arith.constant 0 : i32
    %0 = arith.cmpi eq, %arg0, %c0_i32 : i32
    %1 = arith.extui %0 : i1 to i32
    %c0_i32_0 = arith.constant 0 : i32
    %2 = arith.cmpi ne, %1, %c0_i32_0 : i32
    scf.if %2 {
      %c0_65 = arith.constant 0 : index
      %c0_66 = arith.constant 0 : index
      %170 = vector.load %arg1[%c0_65, %c0_66] : memref<16x32xf32, #tpu.memory_space<vmem>>, vector<16x32xf32>
      %c0_67 = arith.constant 0 : index
      %c0_68 = arith.constant 0 : index
      %171 = vector.load %arg3[%c0_67, %c0_68] : memref<1x32xf32, #tpu.memory_space<vmem>>, vector<1x32xf32>
      %c0_69 = arith.constant 0 : index
      %c0_70 = arith.constant 0 : index
      %172 = vector.load %arg4[%c0_69, %c0_70] : memref<1x32xf32, #tpu.memory_space<vmem>>, vector<1x32xf32>
      %cst_71 = arith.constant dense<0.000000e+00> : vector<16xf32>
      %173 = vector.multi_reduction <add>, %170, %cst_71 [1] : vector<16x32xf32> to vector<16xf32>
      %174 = vector.shape_cast %173 : vector<16xf32> to vector<16x1xf32>
      %cst_72 = arith.constant 3.200000e+01 : f32
      %175 = vector.broadcast %cst_72 : f32 to vector<16x1xf32>
      %176 = arith.divf %174, %175 : vector<16x1xf32>
      %177 = vector.broadcast %176 : vector<16x1xf32> to vector<16x32xf32>
      %178 = arith.subf %170, %177 : vector<16x32xf32>
      %179 = arith.mulf %178, %178 : vector<16x32xf32>
      %cst_73 = arith.constant dense<0.000000e+00> : vector<16xf32>
      %180 = vector.multi_reduction <add>, %179, %cst_73 [1] : vector<16x32xf32> to vector<16xf32>
      %181 = vector.shape_cast %180 : vector<16xf32> to vector<16x1xf32>
      %cst_74 = arith.constant 3.200000e+01 : f32
      %182 = vector.broadcast %cst_74 : f32 to vector<16x1xf32>
      %183 = arith.divf %181, %182 : vector<16x1xf32>
      %184 = vector.broadcast %176 : vector<16x1xf32> to vector<16x32xf32>
      %185 = arith.subf %170, %184 : vector<16x32xf32>
      %cst_75 = arith.constant 9.99999974E-6 : f32
      %186 = vector.broadcast %cst_75 : f32 to vector<16x1xf32>
      %187 = arith.addf %183, %186 : vector<16x1xf32>
      %188 = math.rsqrt %187 : vector<16x1xf32>
      %189 = vector.broadcast %188 : vector<16x1xf32> to vector<16x32xf32>
      %190 = arith.mulf %185, %189 : vector<16x32xf32>
      %191 = vector.broadcast %171 : vector<1x32xf32> to vector<16x32xf32>
      %192 = arith.mulf %190, %191 : vector<16x32xf32>
      %193 = vector.broadcast %172 : vector<1x32xf32> to vector<16x32xf32>
      %194 = arith.addf %192, %193 : vector<16x32xf32>
      %c0_76 = arith.constant 0 : index
      %c0_77 = arith.constant 0 : index
      %195 = vector.load %arg22[%c0_76, %c0_77] : memref<16x32xf32, #tpu.memory_space<vmem>>, vector<16x32xf32>
      tpu.vector_store %arg22[%c0_76, %c0_77], %194 {strides = array<i32>} : memref<16x32xf32, #tpu.memory_space<vmem>>, vector<16x32xf32>,
    } else {
    }
    %c0 = arith.constant 0 : index
    %c0_1 = arith.constant 0 : index
    %3 = vector.load %arg22[%c0, %c0_1] : memref<16x32xf32, #tpu.memory_space<vmem>>, vector<16x32xf32>
    %4 = arith.truncf %3 : vector<16x32xf32> to vector<16x32xbf16>
    %c0_2 = arith.constant 0 : index
    %c0_3 = arith.constant 0 : index
    %c0_4 = arith.constant 0 : index
    %5 = vector.load %arg5[%c0_2, %c0_3, %c0_4] : memref<1x32x96xbf16, #tpu.memory_space<vmem>>, vector<1x32x96xbf16>
    %6 = vector.shape_cast %5 : vector<1x32x96xbf16> to vector<32x96xbf16>
    %cst = arith.constant dense<0.000000e+00> : vector<16x96xf32>
    %7 = tpu.matmul %4, %6, %cst {dimension_numbers = #tpu.dot_dimension_numbers<[1], [0], [0], [1], [0, 0, 1, 1], [], []>} : vector<16x32xbf16>, vector<32x96xbf16>, vector<16x96xf32> -> vector<16x96xf32>
    %c0_5 = arith.constant 0 : index
    %c0_6 = arith.constant 0 : index
    %c0_7 = arith.constant 0 : index
    %8 = vector.load %arg6[%c0_5, %c0_6, %c0_7] : memref<1x1x96xf32, #tpu.memory_space<vmem>>, vector<1x1x96xf32>
    %9 = vector.shape_cast %8 : vector<1x1x96xf32> to vector<1x96xf32>
    %10 = vector.broadcast %9 : vector<1x96xf32> to vector<16x96xf32>
    %11 = arith.addf %7, %10 : vector<16x96xf32>
    %12 = vector.extract_strided_slice %11 {offsets = [0, 0], sizes = [16, 32], strides = [1, 1]} : vector<16x96xf32> to vector<16x32xf32>
    %13 = vector.extract_strided_slice %11 {offsets = [0, 32], sizes = [16, 32], strides = [1, 1]} : vector<16x96xf32> to vector<16x32xf32>
    %14 = vector.extract_strided_slice %11 {offsets = [0, 64], sizes = [16, 32], strides = [1, 1]} : vector<16x96xf32> to vector<16x32xf32>
    %15 = vector.extract_strided_slice %12 {offsets = [0, 0], sizes = [16, 8], strides = [1, 1]} : vector<16x32xf32> to vector<16x8xf32>
    %16 = vector.extract_strided_slice %12 {offsets = [0, 8], sizes = [16, 8], strides = [1, 1]} : vector<16x32xf32> to vector<16x8xf32>
    %17 = vector.extract_strided_slice %12 {offsets = [0, 16], sizes = [16, 8], strides = [1, 1]} : vector<16x32xf32> to vector<16x8xf32>
    %18 = vector.extract_strided_slice %12 {offsets = [0, 24], sizes = [16, 8], strides = [1, 1]} : vector<16x32xf32> to vector<16x8xf32>
    %19 = vector.shape_cast %15 : vector<16x8xf32> to vector<1x16x8xf32>
    %20 = vector.shape_cast %16 : vector<16x8xf32> to vector<1x16x8xf32>
    %21 = vector.shape_cast %17 : vector<16x8xf32> to vector<1x16x8xf32>
    %22 = vector.shape_cast %18 : vector<16x8xf32> to vector<1x16x8xf32>
    %23 = tpu.concatenate %19, %20, %21, %22 in 0 : vector<1x16x8xf32>, vector<1x16x8xf32>, vector<1x16x8xf32>, vector<1x16x8xf32> -> vector<4x16x8xf32>
    %24 = vector.shape_cast %23 : vector<4x16x8xf32> to vector<8x8x8xf32>
    %25 = arith.truncf %24 : vector<8x8x8xf32> to vector<8x8x8xbf16>
    %26 = vector.extract_strided_slice %13 {offsets = [0, 0], sizes = [16, 8], strides = [1, 1]} : vector<16x32xf32> to vector<16x8xf32>
    %27 = vector.extract_strided_slice %13 {offsets = [0, 8], sizes = [16, 8], strides = [1, 1]} : vector<16x32xf32> to vector<16x8xf32>
    %28 = vector.extract_strided_slice %13 {offsets = [0, 16], sizes = [16, 8], strides = [1, 1]} : vector<16x32xf32> to vector<16x8xf32>
    %29 = vector.extract_strided_slice %13 {offsets = [0, 24], sizes = [16, 8], strides = [1, 1]} : vector<16x32xf32> to vector<16x8xf32>
    %30 = vector.shape_cast %26 : vector<16x8xf32> to vector<1x16x8xf32>
    %31 = vector.shape_cast %27 : vector<16x8xf32> to vector<1x16x8xf32>
    %32 = vector.shape_cast %28 : vector<16x8xf32> to vector<1x16x8xf32>
    %33 = vector.shape_cast %29 : vector<16x8xf32> to vector<1x16x8xf32>
    %34 = tpu.concatenate %30, %31, %32, %33 in 0 : vector<1x16x8xf32>, vector<1x16x8xf32>, vector<1x16x8xf32>, vector<1x16x8xf32> -> vector<4x16x8xf32>
    %35 = vector.shape_cast %34 : vector<4x16x8xf32> to vector<8x8x8xf32>
    %36 = arith.truncf %35 : vector<8x8x8xf32> to vector<8x8x8xbf16>
    %37 = vector.extract_strided_slice %14 {offsets = [0, 0], sizes = [16, 8], strides = [1, 1]} : vector<16x32xf32> to vector<16x8xf32>
    %38 = vector.extract_strided_slice %14 {offsets = [0, 8], sizes = [16, 8], strides = [1, 1]} : vector<16x32xf32> to vector<16x8xf32>
    %39 = vector.extract_strided_slice %14 {offsets = [0, 16], sizes = [16, 8], strides = [1, 1]} : vector<16x32xf32> to vector<16x8xf32>
    %40 = vector.extract_strided_slice %14 {offsets = [0, 24], sizes = [16, 8], strides = [1, 1]} : vector<16x32xf32> to vector<16x8xf32>
    %41 = vector.shape_cast %37 : vector<16x8xf32> to vector<1x16x8xf32>
    %42 = vector.shape_cast %38 : vector<16x8xf32> to vector<1x16x8xf32>
    %43 = vector.shape_cast %39 : vector<16x8xf32> to vector<1x16x8xf32>
    %44 = vector.shape_cast %40 : vector<16x8xf32> to vector<1x16x8xf32>
    %45 = tpu.concatenate %41, %42, %43, %44 in 0 : vector<1x16x8xf32>, vector<1x16x8xf32>, vector<1x16x8xf32>, vector<1x16x8xf32> -> vector<4x16x8xf32>
    %46 = vector.shape_cast %45 : vector<4x16x8xf32> to vector<8x8x8xf32>
    %47 = arith.truncf %46 : vector<8x8x8xf32> to vector<8x8x8xbf16>
    "tpu.trace_start"() <{level = 10 : i32, message = "bqd,bkd->bqk"}> : () -> ()
    %cst_8 = arith.constant dense<0.000000e+00> : vector<8x8x8xf32>
    %48 = tpu.matmul %25, %36, %cst_8 {dimension_numbers = #tpu.dot_dimension_numbers<[2], [2], [1], [1], [0, 0, 0, 1, 1, 1], [0], [0]>} : vector<8x8x8xbf16>, vector<8x8x8xbf16>, vector<8x8x8xf32> -> vector<8x8x8xf32>
    "tpu.trace_stop"() : () -> ()
    %c0_9 = arith.constant 0 : index
    %c0_10 = arith.constant 0 : index
    %c0_11 = arith.constant 0 : index
    %49 = vector.load %arg2[%c0_9, %c0_10, %c0_11] : memref<8x1x8xf32, #tpu.memory_space<vmem>>, vector<8x1x8xf32>
    %50 = vector.broadcast %49 : vector<8x1x8xf32> to vector<8x8x8xf32>
    %51 = arith.addf %48, %50 : vector<8x8x8xf32>
    %cst_12 = arith.constant dense<0xFF800000> : vector<8x8xf32>
    %52 = vector.multi_reduction <maximumf>, %51, %cst_12 [2] : vector<8x8x8xf32> to vector<8x8xf32>
    %53 = vector.shape_cast %52 : vector<8x8xf32> to vector<8x8x1xf32>
    %54 = vector.broadcast %53 : vector<8x8x1xf32> to vector<8x8x8xf32>
    %55 = arith.subf %51, %54 : vector<8x8x8xf32>
    %56 = math.exp %55 : vector<8x8x8xf32>
    %cst_13 = arith.constant dense<0.000000e+00> : vector<8x8xf32>
    %57 = vector.multi_reduction <add>, %56, %cst_13 [2] : vector<8x8x8xf32> to vector<8x8xf32>
    %58 = vector.shape_cast %57 : vector<8x8xf32> to vector<8x8x1xf32>
    %59 = tpu.reciprocal %58 {approx = true} : vector<8x8x1xf32> -> vector<8x8x1xf32>
    %60 = vector.broadcast %59 : vector<8x8x1xf32> to vector<8x8x8xf32>
    %61 = arith.mulf %56, %60 : vector<8x8x8xf32>
    %62 = arith.truncf %61 : vector<8x8x8xf32> to vector<8x8x8xbf16>
    "tpu.trace_start"() <{level = 10 : i32, message = "bqk,bkd->bqd"}> : () -> ()
    %cst_14 = arith.constant dense<0.000000e+00> : vector<8x8x8xf32>
    %63 = tpu.matmul %62, %47, %cst_14 {dimension_numbers = #tpu.dot_dimension_numbers<[2], [1], [1], [2], [0, 0, 0, 1, 1, 2], [0], [0]>} : vector<8x8x8xbf16>, vector<8x8x8xbf16>, vector<8x8x8xf32> -> vector<8x8x8xf32>
    "tpu.trace_stop"() : () -> ()
    %64 = vector.shape_cast %63 : vector<8x8x8xf32> to vector<4x16x8xf32>
    %65 = vector.extract_strided_slice %64 {offsets = [0, 0, 0], sizes = [1, 16, 8], strides = [1, 1, 1]} : vector<4x16x8xf32> to vector<1x16x8xf32>
    %66 = vector.shape_cast %65 : vector<1x16x8xf32> to vector<16x8xf32>
    %67 = vector.extract_strided_slice %64 {offsets = [1, 0, 0], sizes = [1, 16, 8], strides = [1, 1, 1]} : vector<4x16x8xf32> to vector<1x16x8xf32>
    %68 = vector.shape_cast %67 : vector<1x16x8xf32> to vector<16x8xf32>
    %69 = vector.extract_strided_slice %64 {offsets = [2, 0, 0], sizes = [1, 16, 8], strides = [1, 1, 1]} : vector<4x16x8xf32> to vector<1x16x8xf32>
    %70 = vector.shape_cast %69 : vector<1x16x8xf32> to vector<16x8xf32>
    %71 = vector.extract_strided_slice %64 {offsets = [3, 0, 0], sizes = [1, 16, 8], strides = [1, 1, 1]} : vector<4x16x8xf32> to vector<1x16x8xf32>
    %72 = vector.shape_cast %71 : vector<1x16x8xf32> to vector<16x8xf32>
    %73 = tpu.concatenate %66, %68, %70, %72 in 1 : vector<16x8xf32>, vector<16x8xf32>, vector<16x8xf32>, vector<16x8xf32> -> vector<16x32xf32>
    %74 = arith.truncf %73 : vector<16x32xf32> to vector<16x32xbf16>
    %c0_15 = arith.constant 0 : index
    %c0_16 = arith.constant 0 : index
    %c0_17 = arith.constant 0 : index
    %75 = vector.load %arg7[%c0_15, %c0_16, %c0_17] : memref<1x32x32xbf16, #tpu.memory_space<vmem>>, vector<1x32x32xbf16>
    %76 = vector.shape_cast %75 : vector<1x32x32xbf16> to vector<32x32xbf16>
    %cst_18 = arith.constant dense<0.000000e+00> : vector<16x32xf32>
    %77 = tpu.matmul %74, %76, %cst_18 {dimension_numbers = #tpu.dot_dimension_numbers<[1], [0], [0], [1], [0, 0, 1, 1], [], []>} : vector<16x32xbf16>, vector<32x32xbf16>, vector<16x32xf32> -> vector<16x32xf32>
    %c0_19 = arith.constant 0 : index
    %c0_20 = arith.constant 0 : index
    %c0_21 = arith.constant 0 : index
    %78 = vector.load %arg8[%c0_19, %c0_20, %c0_21] : memref<1x1x32xf32, #tpu.memory_space<vmem>>, vector<1x1x32xf32>
    %79 = vector.shape_cast %78 : vector<1x1x32xf32> to vector<1x32xf32>
    %80 = vector.broadcast %79 : vector<1x32xf32> to vector<16x32xf32>
    %81 = arith.addf %77, %80 : vector<16x32xf32>
    %82 = arith.addf %3, %81 : vector<16x32xf32>
    %c0_22 = arith.constant 0 : index
    %c0_23 = arith.constant 0 : index
    %c0_24 = arith.constant 0 : index
    %83 = vector.load %arg9[%c0_22, %c0_23, %c0_24] : memref<1x1x32xf32, #tpu.memory_space<vmem>>, vector<1x1x32xf32>
    %84 = vector.shape_cast %83 : vector<1x1x32xf32> to vector<1x32xf32>
    %c0_25 = arith.constant 0 : index
    %c0_26 = arith.constant 0 : index
    %c0_27 = arith.constant 0 : index
    %85 = vector.load %arg10[%c0_25, %c0_26, %c0_27] : memref<1x1x32xf32, #tpu.memory_space<vmem>>, vector<1x1x32xf32>
    %86 = vector.shape_cast %85 : vector<1x1x32xf32> to vector<1x32xf32>
    %cst_28 = arith.constant dense<0.000000e+00> : vector<16xf32>
    %87 = vector.multi_reduction <add>, %82, %cst_28 [1] : vector<16x32xf32> to vector<16xf32>
    %88 = vector.shape_cast %87 : vector<16xf32> to vector<16x1xf32>
    %cst_29 = arith.constant 3.200000e+01 : f32
    %89 = vector.broadcast %cst_29 : f32 to vector<16x1xf32>
    %90 = arith.divf %88, %89 : vector<16x1xf32>
    %91 = vector.broadcast %90 : vector<16x1xf32> to vector<16x32xf32>
    %92 = arith.subf %82, %91 : vector<16x32xf32>
    %93 = arith.mulf %92, %92 : vector<16x32xf32>
    %cst_30 = arith.constant dense<0.000000e+00> : vector<16xf32>
    %94 = vector.multi_reduction <add>, %93, %cst_30 [1] : vector<16x32xf32> to vector<16xf32>
    %95 = vector.shape_cast %94 : vector<16xf32> to vector<16x1xf32>
    %cst_31 = arith.constant 3.200000e+01 : f32
    %96 = vector.broadcast %cst_31 : f32 to vector<16x1xf32>
    %97 = arith.divf %95, %96 : vector<16x1xf32>
    %98 = vector.broadcast %90 : vector<16x1xf32> to vector<16x32xf32>
    %99 = arith.subf %82, %98 : vector<16x32xf32>
    %cst_32 = arith.constant 9.99999974E-6 : f32
    %100 = vector.broadcast %cst_32 : f32 to vector<16x1xf32>
    %101 = arith.addf %97, %100 : vector<16x1xf32>
    %102 = math.rsqrt %101 : vector<16x1xf32>
    %103 = vector.broadcast %102 : vector<16x1xf32> to vector<16x32xf32>
    %104 = arith.mulf %99, %103 : vector<16x32xf32>
    %105 = vector.broadcast %84 : vector<1x32xf32> to vector<16x32xf32>
    %106 = arith.mulf %104, %105 : vector<16x32xf32>
    %107 = vector.broadcast %86 : vector<1x32xf32> to vector<16x32xf32>
    %108 = arith.addf %106, %107 : vector<16x32xf32>
    %109 = arith.truncf %108 : vector<16x32xf32> to vector<16x32xbf16>
    %c0_33 = arith.constant 0 : index
    %c0_34 = arith.constant 0 : index
    %c0_35 = arith.constant 0 : index
    %110 = vector.load %arg11[%c0_33, %c0_34, %c0_35] : memref<1x32x64xbf16, #tpu.memory_space<vmem>>, vector<1x32x64xbf16>
    %111 = vector.shape_cast %110 : vector<1x32x64xbf16> to vector<32x64xbf16>
    %cst_36 = arith.constant dense<0.000000e+00> : vector<16x64xf32>
    %112 = tpu.matmul %109, %111, %cst_36 {dimension_numbers = #tpu.dot_dimension_numbers<[1], [0], [0], [1], [0, 0, 1, 1], [], []>} : vector<16x32xbf16>, vector<32x64xbf16>, vector<16x64xf32> -> vector<16x64xf32>
    %c0_37 = arith.constant 0 : index
    %c0_38 = arith.constant 0 : index
    %c0_39 = arith.constant 0 : index
    %113 = vector.load %arg12[%c0_37, %c0_38, %c0_39] : memref<1x1x64xf32, #tpu.memory_space<vmem>>, vector<1x1x64xf32>
    %114 = vector.shape_cast %113 : vector<1x1x64xf32> to vector<1x64xf32>
    %115 = vector.broadcast %114 : vector<1x64xf32> to vector<16x64xf32>
    %116 = arith.addf %112, %115 : vector<16x64xf32>
    %cst_40 = arith.constant 0.636619746 : f32
    %117 = math.sqrt %cst_40 : f32
    %cst_41 = arith.constant 5.000000e-01 : f32
    %118 = vector.broadcast %cst_41 : f32 to vector<16x64xf32>
    %119 = arith.mulf %118, %116 : vector<16x64xf32>
    %cst_42 = arith.constant 4.471500e-02 : f32
    %120 = vector.broadcast %cst_42 : f32 to vector<16x64xf32>
    %121 = arith.mulf %120, %116 : vector<16x64xf32>
    %122 = arith.mulf %121, %116 : vector<16x64xf32>
    %123 = arith.mulf %122, %116 : vector<16x64xf32>
    %124 = arith.addf %116, %123 : vector<16x64xf32>
    %125 = vector.broadcast %117 : f32 to vector<16x64xf32>
    %126 = arith.mulf %125, %124 : vector<16x64xf32>
    %127 = math.tanh %126 : vector<16x64xf32>
    %cst_43 = arith.constant 1.000000e+00 : f32
    %128 = vector.broadcast %cst_43 : f32 to vector<16x64xf32>
    %129 = arith.addf %128, %127 : vector<16x64xf32>
    %130 = arith.mulf %119, %129 : vector<16x64xf32>
    %131 = arith.truncf %130 : vector<16x64xf32> to vector<16x64xbf16>
    %c0_44 = arith.constant 0 : index
    %c0_45 = arith.constant 0 : index
    %c0_46 = arith.constant 0 : index
    %132 = vector.load %arg13[%c0_44, %c0_45, %c0_46] : memref<1x64x32xbf16, #tpu.memory_space<vmem>>, vector<1x64x32xbf16>
    %133 = vector.shape_cast %132 : vector<1x64x32xbf16> to vector<64x32xbf16>
    %cst_47 = arith.constant dense<0.000000e+00> : vector<16x32xf32>
    %134 = tpu.matmul %131, %133, %cst_47 {dimension_numbers = #tpu.dot_dimension_numbers<[1], [0], [0], [1], [0, 0, 1, 1], [], []>} : vector<16x64xbf16>, vector<64x32xbf16>, vector<16x32xf32> -> vector<16x32xf32>
    %c0_48 = arith.constant 0 : index
    %c0_49 = arith.constant 0 : index
    %c0_50 = arith.constant 0 : index
    %135 = vector.load %arg14[%c0_48, %c0_49, %c0_50] : memref<1x1x32xf32, #tpu.memory_space<vmem>>, vector<1x1x32xf32>
    %136 = vector.shape_cast %135 : vector<1x1x32xf32> to vector<1x32xf32>
    %137 = vector.broadcast %136 : vector<1x32xf32> to vector<16x32xf32>
    %138 = arith.addf %134, %137 : vector<16x32xf32>
    %139 = arith.addf %108, %138 : vector<16x32xf32>
    %c0_51 = arith.constant 0 : index
    %c0_52 = arith.constant 0 : index
    %c0_53 = arith.constant 0 : index
    %140 = vector.load %arg15[%c0_51, %c0_52, %c0_53] : memref<1x1x32xf32, #tpu.memory_space<vmem>>, vector<1x1x32xf32>
    %141 = vector.shape_cast %140 : vector<1x1x32xf32> to vector<1x32xf32>
    %c0_54 = arith.constant 0 : index
    %c0_55 = arith.constant 0 : index
    %c0_56 = arith.constant 0 : index
    %142 = vector.load %arg16[%c0_54, %c0_55, %c0_56] : memref<1x1x32xf32, #tpu.memory_space<vmem>>, vector<1x1x32xf32>
    %143 = vector.shape_cast %142 : vector<1x1x32xf32> to vector<1x32xf32>
    %cst_57 = arith.constant dense<0.000000e+00> : vector<16xf32>
    %144 = vector.multi_reduction <add>, %139, %cst_57 [1] : vector<16x32xf32> to vector<16xf32>
    %145 = vector.shape_cast %144 : vector<16xf32> to vector<16x1xf32>
    %cst_58 = arith.constant 3.200000e+01 : f32
    %146 = vector.broadcast %cst_58 : f32 to vector<16x1xf32>
    %147 = arith.divf %145, %146 : vector<16x1xf32>
    %148 = vector.broadcast %147 : vector<16x1xf32> to vector<16x32xf32>
    %149 = arith.subf %139, %148 : vector<16x32xf32>
    %150 = arith.mulf %149, %149 : vector<16x32xf32>
    %cst_59 = arith.constant dense<0.000000e+00> : vector<16xf32>
    %151 = vector.multi_reduction <add>, %150, %cst_59 [1] : vector<16x32xf32> to vector<16xf32>
    %152 = vector.shape_cast %151 : vector<16xf32> to vector<16x1xf32>
    %cst_60 = arith.constant 3.200000e+01 : f32
    %153 = vector.broadcast %cst_60 : f32 to vector<16x1xf32>
    %154 = arith.divf %152, %153 : vector<16x1xf32>
    %155 = vector.broadcast %147 : vector<16x1xf32> to vector<16x32xf32>
    %156 = arith.subf %139, %155 : vector<16x32xf32>
    %cst_61 = arith.constant 9.99999974E-6 : f32
    %157 = vector.broadcast %cst_61 : f32 to vector<16x1xf32>
    %158 = arith.addf %154, %157 : vector<16x1xf32>
    %159 = math.rsqrt %158 : vector<16x1xf32>
    %160 = vector.broadcast %159 : vector<16x1xf32> to vector<16x32xf32>
    %161 = arith.mulf %156, %160 : vector<16x32xf32>
    %162 = vector.broadcast %141 : vector<1x32xf32> to vector<16x32xf32>
    %163 = arith.mulf %161, %162 : vector<16x32xf32>
    %164 = vector.broadcast %143 : vector<1x32xf32> to vector<16x32xf32>
    %165 = arith.addf %163, %164 : vector<16x32xf32>
    %c0_62 = arith.constant 0 : index
    %c0_63 = arith.constant 0 : index
    %166 = vector.load %arg22[%c0_62, %c0_63] : memref<16x32xf32, #tpu.memory_space<vmem>>, vector<16x32xf32>
    tpu.vector_store %arg22[%c0_62, %c0_63], %165 {strides = array<i32>} : memref<16x32xf32, #tpu.memory_space<vmem>>, vector<16x32xf32>,
    %c1_i32 = arith.constant 1 : i32
    %167 = arith.cmpi eq, %arg0, %c1_i32 : i32
    %168 = arith.extui %167 : i1 to i32
    %c0_i32_64 = arith.constant 0 : i32
    %169 = arith.cmpi ne, %168, %c0_i32_64 : i32
    scf.if %169 {
      %170 = vector.shape_cast %165 : vector<16x32xf32> to vector<2x8x32xf32>
      %171 = vector.extract_strided_slice %170 {offsets = [0, 0, 0], sizes = [2, 1, 32], strides = [1, 1, 1]} : vector<2x8x32xf32> to vector<2x1x32xf32>
      %172 = vector.shape_cast %171 : vector<2x1x32xf32> to vector<2x32xf32>
      %173 = arith.truncf %172 : vector<2x32xf32> to vector<2x32xbf16>
      %c0_65 = arith.constant 0 : index
      %c0_66 = arith.constant 0 : index
      %174 = vector.load %arg17[%c0_65, %c0_66] : memref<32x32xbf16, #tpu.memory_space<vmem>>, vector<32x32xbf16>
      %cst_67 = arith.constant dense<0.000000e+00> : vector<2x32xf32>
      %175 = tpu.matmul %173, %174, %cst_67 {dimension_numbers = #tpu.dot_dimension_numbers<[1], [0], [0], [1], [0, 0, 1, 1], [], []>} : vector<2x32xbf16>, vector<32x32xbf16>, vector<2x32xf32> -> vector<2x32xf32>
      %c0_68 = arith.constant 0 : index
      %c0_69 = arith.constant 0 : index
      %176 = vector.load %arg18[%c0_68, %c0_69] : memref<1x32xf32, #tpu.memory_space<vmem>>, vector<1x32xf32>
      %177 = vector.broadcast %176 : vector<1x32xf32> to vector<2x32xf32>
      %178 = arith.addf %175, %177 : vector<2x32xf32>
      %179 = math.tanh %178 : vector<2x32xf32>
      %180 = arith.truncf %179 : vector<2x32xf32> to vector<2x32xbf16>
      %c0_70 = arith.constant 0 : index
      %c0_71 = arith.constant 0 : index
      %181 = vector.load %arg19[%c0_70, %c0_71] : memref<32x128xbf16, #tpu.memory_space<vmem>>, vector<32x128xbf16>
      %cst_72 = arith.constant dense<0.000000e+00> : vector<2x128xf32>
      %182 = tpu.matmul %180, %181, %cst_72 {dimension_numbers = #tpu.dot_dimension_numbers<[1], [0], [0], [1], [0, 0, 1, 1], [], []>} : vector<2x32xbf16>, vector<32x128xbf16>, vector<2x128xf32> -> vector<2x128xf32>
      %c0_73 = arith.constant 0 : index
      %c0_74 = arith.constant 0 : index
      %183 = vector.load %arg20[%c0_73, %c0_74] : memref<1x128xf32, #tpu.memory_space<vmem>>, vector<1x128xf32>
      %184 = vector.broadcast %183 : vector<1x128xf32> to vector<2x128xf32>
      %185 = arith.addf %182, %184 : vector<2x128xf32>
      %c0_75 = arith.constant 0 : index
      %c0_76 = arith.constant 0 : index
      %186 = vector.load %arg21[%c0_75, %c0_76] : memref<2x128xf32, #tpu.memory_space<vmem>>, vector<2x128xf32>
      tpu.vector_store %arg21[%c0_75, %c0_76], %185 {strides = array<i32>} : memref<2x128xf32, #tpu.memory_space<vmem>>, vector<2x128xf32>,
    } else {
    }
    return
  }
  func.func @transform_0(%arg0: i32) -> (i32, i32) {
    %c0_i32 = arith.constant 0 : i32
    %c0_i32_0 = arith.constant 0 : i32
    %c0_i32_1 = arith.constant 0 : i32
    return %c0_i32, %c0_i32_0 : i32, i32
  }
  func.func @transform_1(%arg0: i32) -> (i32, i32, i32) {
    %c0_i32 = arith.constant 0 : i32
    %c0_i32_0 = arith.constant 0 : i32
    %c0_i32_1 = arith.constant 0 : i32
    %c0_i32_2 = arith.constant 0 : i32
    return %c0_i32, %c0_i32_0, %c0_i32_1 : i32, i32, i32
  }
  func.func @transform_2(%arg0: i32) -> (i32, i32) {
    %c0_i32 = arith.constant 0 : i32
    %c0_i32_0 = arith.constant 0 : i32
    %c0_i32_1 = arith.constant 0 : i32
    return %c0_i32, %c0_i32_0 : i32, i32
  }
  func.func @transform_3(%arg0: i32) -> (i32, i32) {
    %c0_i32 = arith.constant 0 : i32
    %c0_i32_0 = arith.constant 0 : i32
    %c0_i32_1 = arith.constant 0 : i32
    return %c0_i32, %c0_i32_0 : i32, i32
  }
  func.func @transform_4(%arg0: i32) -> (i32, i32, i32) {
    %c0_i32 = arith.constant 0 : i32
    %c0_i32_0 = arith.constant 0 : i32
    %c0_i32_1 = arith.constant 0 : i32
    return %arg0, %c0_i32, %c0_i32_0 : i32, i32, i32
  }
  func.func @transform_5(%arg0: i32) -> (i32, i32, i32) {
    %c0_i32 = arith.constant 0 : i32
    %c0_i32_0 = arith.constant 0 : i32
    %c0_i32_1 = arith.constant 0 : i32
    return %arg0, %c0_i32, %c0_i32_0 : i32, i32, i32
  }
  func.func @transform_6(%arg0: i32) -> (i32, i32, i32) {
    %c0_i32 = arith.constant 0 : i32
    %c0_i32_0 = arith.constant 0 : i32
    %c0_i32_1 = arith.constant 0 : i32
    return %arg0, %c0_i32, %c0_i32_0 : i32, i32, i32
  }
  func.func @transform_7(%arg0: i32) -> (i32, i32, i32) {
    %c0_i32 = arith.constant 0 : i32
    %c0_i32_0 = arith.constant 0 : i32
    %c0_i32_1 = arith.constant 0 : i32
    return %arg0, %c0_i32, %c0_i32_0 : i32, i32, i32
  }
  func.func @transform_8(%arg0: i32) -> (i32, i32, i32) {
    %c0_i32 = arith.constant 0 : i32
    %c0_i32_0 = arith.constant 0 : i32
    %c0_i32_1 = arith.constant 0 : i32
    return %arg0, %c0_i32, %c0_i32_0 : i32, i32, i32
  }
  func.func @transform_9(%arg0: i32) -> (i32, i32, i32) {
    %c0_i32 = arith.constant 0 : i32
    %c0_i32_0 = arith.constant 0 : i32
    %c0_i32_1 = arith.constant 0 : i32
    return %arg0, %c0_i32, %c0_i32_0 : i32, i32, i32
  }
  func.func @transform_10(%arg0: i32) -> (i32, i32, i32) {
    %c0_i32 = arith.constant 0 : i32
    %c0_i32_0 = arith.constant 0 : i32
    %c0_i32_1 = arith.constant 0 : i32
    return %arg0, %c0_i32, %c0_i32_0 : i32, i32, i32
  }
  func.func @transform_11(%arg0: i32) -> (i32, i32, i32) {
    %c0_i32 = arith.constant 0 : i32
    %c0_i32_0 = arith.constant 0 : i32
    %c0_i32_1 = arith.constant 0 : i32
    return %arg0, %c0_i32, %c0_i32_0 : i32, i32, i32
  }
  func.func @transform_12(%arg0: i32) -> (i32, i32, i32) {
    %c0_i32 = arith.constant 0 : i32
    %c0_i32_0 = arith.constant 0 : i32
    %c0_i32_1 = arith.constant 0 : i32
    return %arg0, %c0_i32, %c0_i32_0 : i32, i32, i32
  }
  func.func @transform_13(%arg0: i32) -> (i32, i32, i32) {
    %c0_i32 = arith.constant 0 : i32
    %c0_i32_0 = arith.constant 0 : i32
    %c0_i32_1 = arith.constant 0 : i32
    return %arg0, %c0_i32, %c0_i32_0 : i32, i32, i32
  }
  func.func @transform_14(%arg0: i32) -> (i32, i32, i32) {
    %c0_i32 = arith.constant 0 : i32
    %c0_i32_0 = arith.constant 0 : i32
    %c0_i32_1 = arith.constant 0 : i32
    return %arg0, %c0_i32, %c0_i32_0 : i32, i32, i32
  }
  func.func @transform_15(%arg0: i32) -> (i32, i32, i32) {
    %c0_i32 = arith.constant 0 : i32
    %c0_i32_0 = arith.constant 0 : i32
    %c0_i32_1 = arith.constant 0 : i32
    return %arg0, %c0_i32, %c0_i32_0 : i32, i32, i32
  }
  func.func @transform_16(%arg0: i32) -> (i32, i32) {
    %c0_i32 = arith.constant 0 : i32
    %c0_i32_0 = arith.constant 0 : i32
    %c0_i32_1 = arith.constant 0 : i32
    return %c0_i32, %c0_i32_0 : i32, i32
  }
  func.func @transform_17(%arg0: i32) -> (i32, i32) {
    %c0_i32 = arith.constant 0 : i32
    %c0_i32_0 = arith.constant 0 : i32
    %c0_i32_1 = arith.constant 0 : i32
    return %c0_i32, %c0_i32_0 : i32, i32
  }
  func.func @transform_18(%arg0: i32) -> (i32, i32) {
    %c0_i32 = arith.constant 0 : i32
    %c0_i32_0 = arith.constant 0 : i32
    %c0_i32_1 = arith.constant 0 : i32
    return %c0_i32, %c0_i32_0 : i32, i32
  }
  func.func @transform_19(%arg0: i32) -> (i32, i32) {
    %c0_i32 = arith.constant 0 : i32
    %c0_i32_0 = arith.constant 0 : i32
    %c0_i32_1 = arith.constant 0 : i32
    return %c0_i32, %c0_i32_0 : i32, i32
  }
  func.func @transform_20(%arg0: i32) -> (i32, i32) {
    %c0_i32 = arith.constant 0 : i32
    %c0_i32_0 = arith.constant 0 : i32
    %c0_i32_1 = arith.constant 0 : i32
    return %c0_i32, %c0_i32_0 : i32, i32
  }
}

</mosaic_0001>

<bundles_post_ra>
// kernel: tpu_custom_call.1
= control target key start
LH: loop header
LB: loop body
LE: loop exit
PB: predicated region body
PF: predicated region fallthrough
CT: control target
= control target key end

     0   :  { %s4754_s0 = inlined_call_operand.hbm [shape: f32[16,32], index: 0, kind: input, shape index: {}]   ;;  %s4755_s1 = inlined_call_operand.hbm [shape: f32[8,1,8], index: 1, kind: input, shape index: {}]   ;;  %s4756_s2 = inlined_call_operand.hbm [shape: f32[1,32], index: 2, kind: input, shape index: {}]   ;;  %s4757_s3 = inlined_call_operand.hbm [shape: f32[1,32], index: 3, kind: input, shape index: {}]   ;;  %s4758_s4 = inlined_call_operand.vmem [shape: bf16[2,32,96], index: 4, kind: input, shape index: {}]   ;;  %s4759_s5 = inlined_call_operand.hbm [shape: f32[2,1,96], index: 5, kind: input, shape index: {}]   ;;  %s4760_s6 = inlined_call_operand.vmem [shape: bf16[2,32,32], index: 6, kind: input, shape index: {}]   ;;  %s4761_s7 = inlined_call_operand.hbm [shape: f32[2,1,32], index: 7, kind: input, shape index: {}]   ;;  %s4762_s8 = inlined_call_operand.hbm [shape: f32[2,1,32], index: 8, kind: input, shape index: {}]   ;;  %s4763_s9 = inlined_call_operand.hbm [shape: f32[2,1,32], index: 9, kind: input, shape index: {}]   ;;  %s4764_s10 = inlined_call_operand.vmem [shape: bf16[2,32,64], index: 10, kind: input, shape index: {}]   ;;  %s4765_s11 = inlined_call_operand.hbm [shape: f32[2,1,64], index: 11, kind: input, shape index: {}]   ;;  %s4766_s12 = inlined_call_operand.vmem [shape: bf16[2,64,32], index: 12, kind: input, shape index: {}]   ;;  %s4767_s13 = inlined_call_operand.hbm [shape: f32[2,1,32], index: 13, kind: input, shape index: {}]   ;;  %s4768_s14 = inlined_call_operand.hbm [shape: f32[2,1,32], index: 14, kind: input, shape index: {}]   ;;  %s4769_s15 = inlined_call_operand.hbm [shape: f32[2,1,32], index: 15, kind: input, shape index: {}]   ;;  %s4770_s16 = inlined_call_operand.vmem [shape: bf16[32,32], index: 16, kind: input, shape index: {}]   ;;  %s4771_s17 = inlined_call_operand.hbm [shape: f32[1,32], index: 17, kind: input, shape index: {}]   ;;  %s4772_s18 = inlined_call_operand.vmem [shape: bf16[32,128], index: 18, kind: input, shape index: {}]   ;;  %s4773_s19 = inlined_call_operand.vmem [shape: f32[1,128], index: 19, kind: input, shape index: {}]   ;;  %s4774_s20 = inlined_call_operand.hbm [shape: f32[2,128], index: 20, kind: output, shape index: {}]  }
   0x1   :  { %4800 = sst [smem:[#allocation31_spill]] %s4754_s0 }
   0x2   :  { %4801 = sst [smem:[#allocation32_spill]] %s4755_s1 }
   0x3   :  { %4802 = sst [smem:[#allocation33_spill]] %s4756_s2 }
   0x4   :  { %4803 = sst [smem:[#allocation34_spill]] %s4757_s3 }
   0x5   :  { %4804 = sst [smem:[#allocation35_spill]] %s4758_s4 }
   0x6   :  { %4805 = sst [smem:[#allocation36_spill]] %s4759_s5 }
   0x7   :  { %4806 = sst [smem:[#allocation37_spill]] %s4760_s6 }
   0x8   :  { %4807 = sst [smem:[#allocation38_spill]] %s4761_s7 }
   0x9   :  { %4808 = sst [smem:[#allocation39_spill]] %s4762_s8 }
   0xa   :  { %4809 = sst [smem:[#allocation40_spill]] %s4763_s9 }
   0xb   :  { %4810 = sst [smem:[#allocation41_spill]] %s4764_s10 }
   0xc   :  { %4811 = sst [smem:[#allocation42_spill]] %s4766_s12 }
   0xd   :  { %4812 = sst [smem:[#allocation43_spill]] %s4770_s16 }
   0xe   :  { %4813 = sst [smem:[#allocation44_spill]] %s4772_s18 }
   0xf   :  { %4814 = sst [smem:[#allocation45_spill]] %s4773_s19 }
  0x10   :  { %4815 = sst [smem:[#allocation46_spill]] %s4774_s20 }
  0x11   :  { %25 = vsyncpa [#allocation4], 0 }
  0x12   :  { %26 = vsyncpa [#allocation7], 0 }
  0x13   :  { %27 = vsyncpa [#allocation10], 0 }
  0x14   :  { %28 = vsyncpa [#allocation5], 0  ;;  %s3993_s1 = smov 0   ;;  %s3995_s22 = smov 0  }
  0x15   :  { %s3997_s23 = smov 0   ;;  %s3999_s24 = smov 0  }
  0x16 LB: > { %4816 = sst [smem:[#allocation27_spill]] %s3852_s23  ;;  %s4012_s2 = sadd.s32 4294967295, %s3856_s24   ;;  %s3856_s24 = sphi %s3999_s24, %s4876_s24   ;;  %s3852_s23 = sphi %s3997_s23, %s4878_s23   ;;  %s3848_s22 = sphi %s3995_s22, %s4880_s22   ;;  %s3844_s1 = sphi %s3993_s1, %s4879_s1  }
  0x17   : > { %s4015_s25 = sadd.s32 1, %s3856_s24   ;;  %s151_s26 = sadd.s32 1, %s3852_s23 }
  0x18   : > { %4817 = sst [smem:[#allocation28_spill]] %s4015_s25  ;;  %s148_s3 = ssub.s32 %s3856_s24, %s4015_s25 }
  0x19   : > { %p149_p0 = scmp.eq.s32.totalorder %s148_s3, 0  ;;  %p158_p1 = scmp.ne.s32.totalorder %s3852_s23, %s3848_s22 }
  0x1a   : > { %p159_p2 = scmp.eq.s32.totalorder %s3856_s24, 0  ;;  %p164_p3 = scmp.ne.s32.totalorder %s3848_s22, %s3844_s1 }
  0x1b   : > { %s4025_s27 = scalar_select %p149_p0, %s3852_s23, %s151_s26  }
  0x1c   : > { %p4027_p4 = por %p159_p2, %p158_p1  ;;  %p4785_p5 = scmp.eq.s32.totalorder %s4012_s2, 0 }
  0x1d   : > { %4818 = sst [smem:[#allocation29_spill]] %s4025_s27  ;;  %p2859_p6 = scmp.ge.s32.totalorder %s3856_s24, 1 }
  0x1e   : > { %p540_p7 = scmp.lt.s32.totalorder %s3856_s24, 3  ;;  %p4036_p8 = por %p4785_p5, %p164_p3 }
  0x1f   : > { %s3858_s30 = smov [#allocation3]   ;;  %p3240_p13 = scmp.lt.s32.totalorder %s3856_s24, 2 }
  0x20   : > { %s4820_s4 = scalar_select %p4036_p8, 1, 0 }
  0x21   : > { %p4041_p10 = pnand %p2859_p6, %p540_p7  ;;  %s552_s0 = sshll.u32 %s3858_s30, 4  ;;  %s553_s0 = int_to_ptr.vmem [resolvable:$true] %s552_s0 }
  0x22   : > { %4821 = sst [smem:[#allocation30_spill]] %s4820_s4  ;;  %s629_s1 = sand.u32 1, %s3856_s24  }
  0x23   : > { %s4822_s29 = scalar_select %p4041_p10, 1, 0 }
  0x24   : > { %p3194_p11 = pneg %p4041_p10  ;;  %s4056_s3 = sand.u32 1, %s3852_s23  }
  0x25   : > { %p4060_p0 = pnand %p3240_p13, %p4027_p4  ;;  %s4825_s25 = sld [smem:[#allocation31_spill]] }
  0x26   : > { %p4049_p12 = pnand %p3194_p11, %p4785_p5 }
  0x27   : > { %s4824_s26 = scalar_select %p4060_p0, 1, 0 }
  0x28   : > { %s4823_s21 = scalar_select %p4049_p12, 1, 0 }
  0x29   : > { %p4072_p2 = pneg %p4049_p12 }
  0x2b   : > { %s3396_s20 = scalar_lea.hbm %s4825_s25, 256 }
  0x2c   : > { %p3397_p1 = scmp.ne.s32.totalorder %s4825_s25, %s3396_s20  ;;  %p3403_p6 = scmp.lt.u32.totalorder %s3396_s20, %s4825_s25 }
  0x2d   : > { %s4826_s16 = scalar_select %p4072_p2, 1, 0 }
  0x2e   : > { %p3399_p3 = pnand %p4072_p2, %p3397_p1 }
  0x30   : > { %p3400_p4 = pneg %p3399_p3 }
  0x32   : > { %p3405_p7 = pnand %p3403_p6, %p3400_p4 }
  0x34   : > { %3408 = shalt.err (!%p3405_p7)
}
  0x35   : > { %s3409_s27 = scalar_lea.vmem %s553_s0, 256  ;;  %p3417_p5 = scmp.lt.s32.totalorder %s553_s0, %s553_s0 }
  0x36   : > { %p3410_p11 = scmp.ne.s32.totalorder %s553_s0, %s3409_s27  ;;  %p3418_p8 = scmp.lt.s32.totalorder %s3409_s27, %s3409_s27 }
  0x38   : > { %p3412_p13 = pnand %p3410_p11, %p4072_p2  ;;  %p3419_p10 = por %p3418_p8, %p3417_p5 }
  0x3a   : > { %p3413_p9 = pneg %p3412_p13 }
  0x3c   : > { %p3420_p0 = pnand %p3419_p10, %p3413_p9 }
  0x3e   : > { %3423 = shalt.err (!%p3420_p0)
}
  0x3f   : > { %s3859_s18 = smov 128   ;;  %s3860_s19 = smov 8  }
  0x40   : > { %3197 = dma.hbm_to_vmem [thread:$0]  (!%p4049_p12), %s4825_s25, 256, %s553_s0, [#allocation4], %s3859_s18, %s3859_s18, %s3860_s19  }
  0x41   : > { %s4089_s30 = sshll.u32 %s3856_s24, 4  ;;  %s4827_s5 = sld [smem:[#allocation36_spill]] }
  0x42   : > { %s632_s10 = scalar_lea.vmem [#allocation11], %s4056_s3  ;;  %s4100_s4 = scalar_lea.sflag [#allocation4], %s629_s1 }
  0x43   : > { %s639_s6 = sshll.u32 %s632_s10, 4  ;;  %p4828_p8 = scmp.ne.s32.totalorder %s4824_s26, 0  ;;  %s4098_s6 = int_to_ptr.vmem [resolvable:$true] %s639_s6 }
  0x45   : > { %p4106_p9 = pneg %p4828_p8 }
  0x47   : > { %s4095_s27 = scalar_lea.hbm %s4827_s5, %s4089_s30  ;;  %s3429_s18 = scalar_lea.hbm %s4827_s5, 32 }
  0x48   : > { %s3424_s20 = scalar_lea.hbm %s4095_s27, 16  ;;  %p3430_p1 = scmp.lt.u32.totalorder %s4095_s27, %s4827_s5 }
  0x49   : > { %p3425_p5 = scmp.ne.s32.totalorder %s4095_s27, %s3424_s20  ;;  %p3431_p3 = scmp.lt.u32.totalorder %s3429_s18, %s3424_s20 }
  0x4a   : > { %s4829_s24 = scalar_select %p4106_p9, 1, 0 }
  0x4b   : > { %p3427_p10 = pnand %p4106_p9, %p3425_p5  ;;  %p3432_p4 = por %p3431_p3, %p3430_p1 }
  0x4c   : > { %p3433_p6 = scmp.lt.u32.totalorder %s3424_s20, %s4095_s27 }
  0x4d   : > { %p3428_p0 = pneg %p3427_p10 }
  0x4e   : > { %p3434_p7 = por %p3433_p6, %p3432_p4 }
  0x50   : > { %p3435_p11 = pnand %p3434_p7, %p3428_p0 }
  0x52   : > { %3438 = shalt.err (!%p3435_p11)
}
  0x53   : > { %s3439_s1 = scalar_lea.vmem %s4098_s6, 16  ;;  %s3861_s23 = smov [#allocation11]  }
  0x54   : > { %p3440_p13 = scmp.ne.s32.totalorder %s4098_s6, %s3439_s1  ;;  %s3444_s28 = sshll.u32 %s3861_s23, 4  ;;  %s3445_s28 = int_to_ptr.vmem [resolvable:$false] %s3444_s28 }
  0x55   : > { %s3446_s12 = scalar_lea.vmem %s3445_s28, 32  ;;  %p3447_p12 = scmp.lt.s32.totalorder %s4098_s6, %s3445_s28 }
  0x56   : > { %p3442_p5 = pnand %p3440_p13, %p4106_p9  ;;  %p3448_p2 = scmp.lt.s32.totalorder %s3446_s12, %s3439_s1 }
  0x58   : > { %p3443_p10 = pneg %p3442_p5  ;;  %p3449_p1 = por %p3448_p2, %p3447_p12 }
  0x5a   : > { %p3450_p3 = pnand %p3449_p1, %p3443_p10 }
  0x5c   : > { %3453 = shalt.err (!%p3450_p3)
}
  0x5d   : > { %3213 = dma.hbm_to_vmem [thread:$0]  (!%p4828_p8), %s4095_s27, 16, %s4098_s6, %s4100_s4  }
  0x5e   : > { %s4830_s7 = sld [smem:[#allocation38_spill]]  ;;  %s657_s10 = scalar_lea.vmem [#allocation12], %s4056_s3 }
  0x5f   : > { %s664_s19 = sshll.u32 %s657_s10, 4  ;;  %s665_s19 = int_to_ptr.vmem [resolvable:$true] %s664_s19 }
  0x64   : > { %s4134_s18 = scalar_lea.hbm %s4830_s7, %s4089_s30  ;;  %s3459_s6 = scalar_lea.hbm %s4830_s7, 32 }
  0x65   : > { %s3454_s1 = scalar_lea.hbm %s4134_s18, 16  ;;  %p3460_p4 = scmp.lt.u32.totalorder %s4134_s18, %s4830_s7 }
  0x66   : > { %p3455_p12 = scmp.ne.s32.totalorder %s4134_s18, %s3454_s1  ;;  %p3461_p6 = scmp.lt.u32.totalorder %s3459_s6, %s3454_s1 }
  0x67   : > { %p3463_p11 = scmp.lt.u32.totalorder %s3454_s1, %s4134_s18 }
  0x68   : > { %p3457_p2 = pnand %p3455_p12, %p4106_p9  ;;  %p3462_p7 = por %p3461_p6, %p3460_p4 }
  0x6a   : > { %p3458_p0 = pneg %p3457_p2  ;;  %p3464_p13 = por %p3463_p11, %p3462_p7 }
  0x6c   : > { %p3465_p5 = pnand %p3464_p13, %p3458_p0 }
  0x6e   : > { %3468 = shalt.err (!%p3465_p5)
}
  0x6f   : > { %s3469_s20 = scalar_lea.vmem %s665_s19, 16  ;;  %s3862_s0 = smov [#allocation12]  }
  0x70   : > { %p3470_p10 = scmp.ne.s32.totalorder %s665_s19, %s3469_s20  ;;  %s3474_s10 = sshll.u32 %s3862_s0, 4  ;;  %s3475_s10 = int_to_ptr.vmem [resolvable:$false] %s3474_s10 }
  0x71   : > { %s3476_s23 = scalar_lea.vmem %s3475_s10, 32  ;;  %p3477_p12 = scmp.lt.s32.totalorder %s665_s19, %s3475_s10 }
  0x72   : > { %p3472_p1 = pnand %p3470_p10, %p4106_p9  ;;  %p3478_p2 = scmp.lt.s32.totalorder %s3476_s23, %s3469_s20 }
  0x74   : > { %p3473_p3 = pneg %p3472_p1  ;;  %p3479_p8 = por %p3478_p2, %p3477_p12 }
  0x76   : > { %p3480_p4 = pnand %p3479_p8, %p3473_p3 }
  0x78   : > { %3483 = shalt.err (!%p3480_p4)
}
  0x79   : > { %p4831_p6 = scmp.ne.s32.totalorder %s4824_s26, 0  ;;  %s4832_s8 = sld [smem:[#allocation39_spill]] }
  0x7a   : > { %s674_s27 = scalar_lea.vmem [#allocation13], %s4056_s3 }
  0x7b   : > { %3216 = dma.hbm_to_vmem [thread:$0]  (!%p4831_p6), %s4134_s18, 16, %s665_s19, %s4100_s4  }
  0x7c   : > { %s681_s12 = sshll.u32 %s674_s27, 4  ;;  %s682_s12 = int_to_ptr.vmem [resolvable:$true] %s681_s12 }
  0x7f   : > { %s4159_s6 = scalar_lea.hbm %s4832_s8, %s4089_s30  ;;  %s3489_s18 = scalar_lea.hbm %s4832_s8, 32 }
  0x80   : > { %s3484_s20 = scalar_lea.hbm %s4159_s6, 16  ;;  %p3490_p11 = scmp.lt.u32.totalorder %s4159_s6, %s4832_s8 }
  0x81   : > { %p3485_p8 = scmp.ne.s32.totalorder %s4159_s6, %s3484_s20  ;;  %p3491_p13 = scmp.lt.u32.totalorder %s3489_s18, %s3484_s20 }
  0x82   : > { %p3493_p10 = scmp.lt.u32.totalorder %s3484_s20, %s4159_s6 }
  0x83   : > { %p3487_p0 = pnand %p3485_p8, %p4106_p9  ;;  %p3492_p5 = por %p3491_p13, %p3490_p11 }
  0x85   : > { %p3488_p7 = pneg %p3487_p0  ;;  %p3494_p1 = por %p3493_p10, %p3492_p5 }
  0x87   : > { %p3495_p3 = pnand %p3494_p1, %p3488_p7 }
  0x89   : > { %3498 = shalt.err (!%p3495_p3)
}
  0x8a   : > { %s3499_s1 = scalar_lea.vmem %s682_s12, 16  ;;  %s3863_s28 = smov [#allocation13]  }
  0x8b   : > { %p3500_p12 = scmp.ne.s32.totalorder %s682_s12, %s3499_s1  ;;  %s3504_s27 = sshll.u32 %s3863_s28, 4  ;;  %s3505_s27 = int_to_ptr.vmem [resolvable:$false] %s3504_s27 }
  0x8c   : > { %s3506_s0 = scalar_lea.vmem %s3505_s27, 32  ;;  %p3507_p8 = scmp.lt.s32.totalorder %s682_s12, %s3505_s27 }
  0x8d   : > { %p3502_p2 = pnand %p3500_p12, %p4106_p9  ;;  %p3508_p0 = scmp.lt.s32.totalorder %s3506_s0, %s3499_s1 }
  0x8f   : > { %p3503_p4 = pneg %p3502_p2  ;;  %p3509_p6 = por %p3508_p0, %p3507_p8 }
  0x91   : > { %p3510_p11 = pnand %p3509_p6, %p3503_p4 }
  0x93   : > { %3513 = shalt.err (!%p3510_p11)
}
  0x94   : > { %p4833_p13 = scmp.ne.s32.totalorder %s4824_s26, 0  ;;  %s4834_s9 = sld [smem:[#allocation40_spill]] }
  0x95   : > { %s691_s19 = scalar_lea.vmem [#allocation14], %s4056_s3 }
  0x96   : > { %3219 = dma.hbm_to_vmem [thread:$0]  (!%p4833_p13), %s4159_s6, 16, %s682_s12, %s4100_s4  }
  0x97   : > { %s698_s23 = sshll.u32 %s691_s19, 4  ;;  %s699_s23 = int_to_ptr.vmem [resolvable:$true] %s698_s23 }
  0x9a   : > { %s4184_s18 = scalar_lea.hbm %s4834_s9, %s4089_s30  ;;  %s3519_s6 = scalar_lea.hbm %s4834_s9, 32 }
  0x9b   : > { %s3514_s1 = scalar_lea.hbm %s4184_s18, 16  ;;  %p3520_p10 = scmp.lt.u32.totalorder %s4184_s18, %s4834_s9 }
  0x9c   : > { %p3515_p6 = scmp.ne.s32.totalorder %s4184_s18, %s3514_s1  ;;  %p3521_p1 = scmp.lt.u32.totalorder %s3519_s6, %s3514_s1 }
  0x9d   : > { %p3523_p12 = scmp.lt.u32.totalorder %s3514_s1, %s4184_s18 }
  0x9e   : > { %p3517_p7 = pnand %p3515_p6, %p4106_p9  ;;  %p3522_p3 = por %p3521_p1, %p3520_p10 }
  0xa0   : > { %p3518_p5 = pneg %p3517_p7  ;;  %p3524_p2 = por %p3523_p12, %p3522_p3 }
  0xa2   : > { %p3525_p4 = pnand %p3524_p2, %p3518_p5 }
  0xa4   : > { %3528 = shalt.err (!%p3525_p4)
}
  0xa5   : > { %s3529_s20 = scalar_lea.vmem %s699_s23, 16  ;;  %s3864_s10 = smov [#allocation14]  }
  0xa6   : > { %p3530_p8 = scmp.ne.s32.totalorder %s699_s23, %s3529_s20  ;;  %s3534_s19 = sshll.u32 %s3864_s10, 4  ;;  %s3535_s19 = int_to_ptr.vmem [resolvable:$false] %s3534_s19 }
  0xa7   : > { %s3536_s28 = scalar_lea.vmem %s3535_s19, 32  ;;  %p3537_p6 = scmp.lt.s32.totalorder %s699_s23, %s3535_s19 }
  0xa8   : > { %p3532_p0 = pnand %p3530_p8, %p4106_p9  ;;  %p3538_p7 = scmp.lt.s32.totalorder %s3536_s28, %s3529_s20 }
  0xaa   : > { %p3533_p11 = pneg %p3532_p0  ;;  %p3539_p13 = por %p3538_p7, %p3537_p6 }
  0xac   : > { %p3540_p1 = pnand %p3539_p13, %p3533_p11 }
  0xae   : > { %3543 = shalt.err (!%p3540_p1)
}
  0xaf   : > { %p4835_p10 = scmp.ne.s32.totalorder %s4824_s26, 0  ;;  %s4209_s6 = scalar_lea.hbm %s4765_s11, %s4089_s30 }
  0xb0   : > { %s716_s12 = scalar_lea.vmem [#allocation15], %s4056_s3  ;;  %s3544_s20 = scalar_lea.hbm %s4209_s6, 16 }
  0xb1   : > { %3222 = dma.hbm_to_vmem [thread:$0]  (!%p4835_p10), %s4184_s18, 16, %s699_s23, %s4100_s4  }
  0xb2   : > { %s723_s0 = sshll.u32 %s716_s12, 4  ;;  %p3545_p13 = scmp.ne.s32.totalorder %s4209_s6, %s3544_s20  ;;  %s724_s0 = int_to_ptr.vmem [resolvable:$true] %s723_s0 }
  0xb3   : > { %s3549_s18 = scalar_lea.hbm %s4765_s11, 32  ;;  %p3550_p12 = scmp.lt.u32.totalorder %s4209_s6, %s4765_s11 }
  0xb4   : > { %p3547_p5 = pnand %p3545_p13, %p4106_p9  ;;  %p3551_p2 = scmp.lt.u32.totalorder %s3549_s18, %s3544_s20 }
  0xb5   : > { %p3553_p8 = scmp.lt.u32.totalorder %s3544_s20, %s4209_s6 }
  0xb6   : > { %p3548_p3 = pneg %p3547_p5  ;;  %p3552_p4 = por %p3551_p2, %p3550_p12 }
  0xb8   : > { %p3554_p0 = por %p3553_p8, %p3552_p4 }
  0xba   : > { %p3555_p11 = pnand %p3554_p0, %p3548_p3 }
  0xbc   : > { %3558 = shalt.err (!%p3555_p11)
}
  0xbd   : > { %s3559_s1 = scalar_lea.vmem %s724_s0, 16  ;;  %s3865_s27 = smov [#allocation15]  }
  0xbe   : > { %p3560_p6 = scmp.ne.s32.totalorder %s724_s0, %s3559_s1  ;;  %s3564_s12 = sshll.u32 %s3865_s27, 4  ;;  %s3565_s12 = int_to_ptr.vmem [resolvable:$false] %s3564_s12 }
  0xbf   : > { %s3566_s10 = scalar_lea.vmem %s3565_s12, 32  ;;  %p3567_p13 = scmp.lt.s32.totalorder %s724_s0, %s3565_s12 }
  0xc0   : > { %p3562_p7 = pnand %p3560_p6, %p4106_p9  ;;  %p3568_p5 = scmp.lt.s32.totalorder %s3566_s10, %s3559_s1 }
  0xc2   : > { %p3563_p1 = pneg %p3562_p7  ;;  %p3569_p10 = por %p3568_p5, %p3567_p13 }
  0xc4   : > { %p3570_p2 = pnand %p3569_p10, %p3563_p1 }
  0xc6   : > { %3573 = shalt.err (!%p3570_p2)
}
  0xc7   : > { %p4836_p12 = scmp.ne.s32.totalorder %s4824_s26, 0  ;;  %s3866_s20 = smov [#allocation6]  }
  0xc8   : > { %s565_s19 = sshll.u32 %s3866_s20, 4  ;;  %s4837_s28 = sld [smem:[#allocation32_spill]]  ;;  %s566_s19 = int_to_ptr.vmem [resolvable:$true] %s565_s19 }
  0xc9   : > { %3225 = dma.hbm_to_vmem [thread:$0]  (!%p4836_p12), %s4209_s6, 16, %s724_s0, %s4100_s4  }
  0xca   : > { %p4838_p4 = scmp.ne.s32.totalorder %s4826_s16, 0 }
  0xce   : > { %s3574_s27 = scalar_lea.hbm %s4837_s28, 128 }
  0xcf   : > { %p3575_p3 = scmp.ne.s32.totalorder %s4837_s28, %s3574_s27  ;;  %p3581_p0 = scmp.lt.u32.totalorder %s3574_s27, %s4837_s28 }
  0xd1   : > { %p3577_p10 = pnand %p3575_p3, %p4838_p4 }
  0xd3   : > { %p3578_p8 = pneg %p3577_p10 }
  0xd5   : > { %p3583_p11 = pnand %p3581_p0, %p3578_p8 }
  0xd7   : > { %3586 = shalt.err (!%p3583_p11)
}
  0xd8   : > { %s3587_s6 = scalar_lea.vmem %s566_s19, 128  ;;  %p3595_p13 = scmp.lt.s32.totalorder %s566_s19, %s566_s19 }
  0xd9   : > { %p3588_p6 = scmp.ne.s32.totalorder %s566_s19, %s3587_s6  ;;  %p3596_p5 = scmp.lt.s32.totalorder %s3587_s6, %s3587_s6 }
  0xdb   : > { %p3590_p7 = pnand %p3588_p6, %p4838_p4  ;;  %p3597_p2 = por %p3596_p5, %p3595_p13 }
  0xdd   : > { %p3591_p1 = pneg %p3590_p7 }
  0xdf   : > { %p3598_p12 = pnand %p3597_p2, %p3591_p1 }
  0xe1   : > { %3601 = shalt.err (!%p3598_p12)
}
  0xe2   : > { %s3867_s5 = smov 16   ;;  %s3868_s7 = smov 1  }
  0xe3   : > { %p4839_p3 = scmp.ne.s32.totalorder %s4823_s21, 0  ;;  %s4252_s23 = scalar_lea.hbm %s4767_s13, %s4089_s30 }
  0xe4   : > { %s741_s27 = scalar_lea.vmem [#allocation16], %s4056_s3  ;;  %s3869_s12 = smov [#allocation8]  }
  0xe5   : > { %3200 = dma.hbm_to_vmem [thread:$0]  (!%p4839_p3), %s4837_s28, 128, %s566_s19, [#allocation7], %s3867_s5, %s3867_s5, %s3868_s7  }
  0xe6   : > { %s748_s1 = sshll.u32 %s741_s27, 4  ;;  %s579_s6 = sshll.u32 %s3869_s12, 4  ;;  %s4255_s1 = int_to_ptr.vmem [resolvable:$true] %s748_s1  ;;  %s580_s6 = int_to_ptr.vmem [resolvable:$true] %s579_s6 }
  0xe7   : > { %s3602_s8 = scalar_lea.hbm %s4252_s23, 16  ;;  %s3607_s7 = scalar_lea.hbm %s4767_s13, 32 }
  0xe8   : > { %p3603_p12 = scmp.ne.s32.totalorder %s4252_s23, %s3602_s8  ;;  %p3608_p0 = scmp.lt.u32.totalorder %s4252_s23, %s4767_s13 }
  0xe9   : > { %p3609_p11 = scmp.lt.u32.totalorder %s3607_s7, %s3602_s8  ;;  %p3611_p7 = scmp.lt.u32.totalorder %s3602_s8, %s4252_s23 }
  0xea   : > { %p3605_p10 = pnand %p3603_p12, %p4106_p9 }
  0xeb   : > { %p3610_p6 = por %p3609_p11, %p3608_p0 }
  0xec   : > { %p3606_p8 = pneg %p3605_p10 }
  0xed   : > { %p3612_p1 = por %p3611_p7, %p3610_p6 }
  0xef   : > { %p3613_p13 = pnand %p3612_p1, %p3606_p8 }
  0xf1   : > { %3616 = shalt.err (!%p3613_p13)
}
  0xf2   : > { %s3617_s20 = scalar_lea.vmem %s4255_s1, 16  ;;  %s3870_s18 = smov [#allocation16]  }
  0xf3   : > { %p3618_p5 = scmp.ne.s32.totalorder %s4255_s1, %s3617_s20  ;;  %s3622_s27 = sshll.u32 %s3870_s18, 4  ;;  %s3623_s27 = int_to_ptr.vmem [resolvable:$false] %s3622_s27 }
  0xf4   : > { %s3624_s12 = scalar_lea.vmem %s3623_s27, 32  ;;  %p3625_p10 = scmp.lt.s32.totalorder %s4255_s1, %s3623_s27 }
  0xf5   : > { %p3620_p2 = pnand %p3618_p5, %p4106_p9  ;;  %p3626_p3 = scmp.lt.s32.totalorder %s3624_s12, %s3617_s20 }
  0xf7   : > { %p3621_p12 = pneg %p3620_p2  ;;  %p3627_p0 = por %p3626_p3, %p3625_p10 }
  0xf9   : > { %p3628_p11 = pnand %p3627_p0, %p3621_p12 }
  0xfb   : > { %3631 = shalt.err (!%p3628_p11)
}
  0xfc   : > { %p4840_p8 = scmp.ne.s32.totalorder %s4824_s26, 0  ;;  %s4841_s5 = sld [smem:[#allocation33_spill]] }
  0xfe   : > { %3228 = dma.hbm_to_vmem [thread:$0]  (!%p4840_p8), %s4252_s23, 16, %s4255_s1, %s4100_s4  }
 0x102   : > { %s3632_s7 = scalar_lea.hbm %s4841_s5, 16 }
 0x103   : > { %p3633_p6 = scmp.ne.s32.totalorder %s4841_s5, %s3632_s7  ;;  %p3639_p1 = scmp.lt.u32.totalorder %s3632_s7, %s4841_s5 }
 0x105   : > { %p3635_p3 = pnand %p3633_p6, %p4838_p4 }
 0x107   : > { %p3636_p7 = pneg %p3635_p3 }
 0x109   : > { %p3641_p13 = pnand %p3639_p1, %p3636_p7 }
 0x10b   : > { %3644 = shalt.err (!%p3641_p13)
}
 0x10c   : > { %s3645_s27 = scalar_lea.vmem %s580_s6, 16  ;;  %s3652_s23 = scalar_lea.vmem %s580_s6, 32 }
 0x10d   : > { %p3646_p5 = scmp.ne.s32.totalorder %s580_s6, %s3645_s27  ;;  %p3653_p10 = scmp.lt.s32.totalorder %s580_s6, %s580_s6 }
 0x10e   : > { %p3654_p0 = scmp.lt.s32.totalorder %s3652_s23, %s3645_s27 }
 0x10f   : > { %p3648_p2 = pnand %p3646_p5, %p4838_p4 }
 0x110   : > { %p3655_p11 = por %p3654_p0, %p3653_p10 }
 0x111   : > { %p3649_p12 = pneg %p3648_p2 }
 0x113   : > { %p3656_p8 = pnand %p3655_p11, %p3649_p12 }
 0x115   : > { %3659 = shalt.err (!%p3656_p8)
}
 0x116   : > { %p4842_p6 = scmp.ne.s32.totalorder %s4823_s21, 0  ;;  %s4301_s7 = scalar_lea.hbm %s4768_s14, %s4089_s30 }
 0x117   : > { %s758_s0 = scalar_lea.vmem [#allocation17], %s4056_s3  ;;  %s3660_s20 = scalar_lea.hbm %s4301_s7, 16 }
 0x118   : > { %3203 = dma.hbm_to_vmem [thread:$0]  (!%p4842_p6), %s4841_s5, 16, %s580_s6, [#allocation7]  }
 0x119   : > { %s765_s10 = sshll.u32 %s758_s0, 4  ;;  %p3661_p8 = scmp.ne.s32.totalorder %s4301_s7, %s3660_s20  ;;  %s766_s10 = int_to_ptr.vmem [resolvable:$true] %s765_s10 }
 0x11a   : > { %s3665_s6 = scalar_lea.hbm %s4768_s14, 32  ;;  %p3666_p1 = scmp.lt.u32.totalorder %s4301_s7, %s4768_s14 }
 0x11b   : > { %p3663_p3 = pnand %p3661_p8, %p4106_p9  ;;  %p3667_p13 = scmp.lt.u32.totalorder %s3665_s6, %s3660_s20 }
 0x11c   : > { %p3669_p2 = scmp.lt.u32.totalorder %s3660_s20, %s4301_s7 }
 0x11d   : > { %p3664_p7 = pneg %p3663_p3  ;;  %p3668_p5 = por %p3667_p13, %p3666_p1 }
 0x11f   : > { %p3670_p12 = por %p3669_p2, %p3668_p5 }
 0x121   : > { %p3671_p10 = pnand %p3670_p12, %p3664_p7 }
 0x123   : > { %3674 = shalt.err (!%p3671_p10)
}
 0x124   : > { %s3675_s12 = scalar_lea.vmem %s766_s10, 16  ;;  %s3871_s8 = smov [#allocation17]  }
 0x125   : > { %p3676_p0 = scmp.ne.s32.totalorder %s766_s10, %s3675_s12  ;;  %s3680_s19 = sshll.u32 %s3871_s8, 4  ;;  %s3681_s19 = int_to_ptr.vmem [resolvable:$false] %s3680_s19 }
 0x126   : > { %s3682_s0 = scalar_lea.vmem %s3681_s19, 32  ;;  %p3683_p3 = scmp.lt.s32.totalorder %s766_s10, %s3681_s19 }
 0x127   : > { %p3678_p11 = pnand %p3676_p0, %p4106_p9  ;;  %p3684_p6 = scmp.lt.s32.totalorder %s3682_s0, %s3675_s12 }
 0x129   : > { %p3679_p8 = pneg %p3678_p11  ;;  %p3685_p4 = por %p3684_p6, %p3683_p3 }
 0x12b   : > { %p3686_p1 = pnand %p3685_p4, %p3679_p8 }
 0x12d   : > { %3689 = shalt.err (!%p3686_p1)
}
 0x12e   : > { %p4843_p13 = scmp.ne.s32.totalorder %s4824_s26, 0  ;;  %s3872_s20 = smov [#allocation9]  }
 0x12f   : > { %s590_s18 = sshll.u32 %s3872_s20, 4  ;;  %s3873_s27 = smov [#allocation19]   ;;  %s591_s18 = int_to_ptr.vmem [resolvable:$true] %s590_s18 }
 0x130   : > { %3231 = dma.hbm_to_vmem [thread:$0]  (!%p4843_p13), %s4301_s7, 16, %s766_s10, %s4100_s4  }
 0x131   : > { %s604_s6 = sshll.u32 %s3873_s27, 4  ;;  %s4844_s8 = sld [smem:[#allocation34_spill]]  ;;  %s605_s6 = int_to_ptr.vmem [resolvable:$true] %s604_s6 }
 0x132   : > { %p4845_p6 = scmp.ne.s32.totalorder %s4826_s16, 0 }
 0x137   : > { %s3690_s5 = scalar_lea.hbm %s4844_s8, 16 }
 0x138   : > { %p3691_p4 = scmp.ne.s32.totalorder %s4844_s8, %s3690_s5  ;;  %p3697_p2 = scmp.lt.u32.totalorder %s3690_s5, %s4844_s8 }
 0x13a   : > { %p3693_p7 = pnand %p3691_p4, %p4845_p6 }
 0x13c   : > { %p3694_p5 = pneg %p3693_p7 }
 0x13e   : > { %p3699_p12 = pnand %p3697_p2, %p3694_p5 }
 0x140   : > { %3702 = shalt.err (!%p3699_p12)
}
 0x141   : > { %s3703_s7 = scalar_lea.vmem %s591_s18, 16  ;;  %s3710_s10 = scalar_lea.vmem %s591_s18, 32 }
 0x142   : > { %p3704_p10 = scmp.ne.s32.totalorder %s591_s18, %s3703_s7  ;;  %p3711_p8 = scmp.lt.s32.totalorder %s591_s18, %s591_s18 }
 0x143   : > { %p3712_p3 = scmp.lt.s32.totalorder %s3710_s10, %s3703_s7 }
 0x144   : > { %p3706_p0 = pnand %p3704_p10, %p4845_p6 }
 0x145   : > { %p3713_p1 = por %p3712_p3, %p3711_p8 }
 0x146   : > { %p3707_p11 = pneg %p3706_p0 }
 0x148   : > { %p3714_p13 = pnand %p3713_p1, %p3707_p11 }
 0x14a   : > { %3717 = shalt.err (!%p3714_p13)
}
 0x14b   : > { %p4846_p4 = scmp.ne.s32.totalorder %s4823_s21, 0  ;;  %s3718_s23 = scalar_lea.hbm %s4771_s17, 16 }
 0x14c   : > { %p3719_p7 = scmp.ne.s32.totalorder %s4771_s17, %s3718_s23  ;;  %p3725_p13 = scmp.lt.u32.totalorder %s3718_s23, %s4771_s17 }
 0x14d   : > { %3206 = dma.hbm_to_vmem [thread:$0]  (!%p4846_p4), %s4844_s8, 16, %s591_s18, [#allocation10]  }
 0x14e   : > { %p3721_p5 = pnand %p3719_p7, %p4845_p6 }
 0x150   : > { %p3722_p2 = pneg %p3721_p5 }
 0x152   : > { %p3727_p12 = pnand %p3725_p13, %p3722_p2 }
 0x154   : > { %3730 = shalt.err (!%p3727_p12)
}
 0x155   : > { %s3731_s7 = scalar_lea.vmem %s605_s6, 16  ;;  %s3738_s18 = scalar_lea.vmem %s605_s6, 32 }
 0x156   : > { %p3732_p10 = scmp.ne.s32.totalorder %s605_s6, %s3731_s7  ;;  %p3739_p8 = scmp.lt.s32.totalorder %s605_s6, %s605_s6 }
 0x157   : > { %p3740_p3 = scmp.lt.s32.totalorder %s3738_s18, %s3731_s7 }
 0x158   : > { %p3734_p0 = pnand %p3732_p10, %p4845_p6 }
 0x159   : > { %p3741_p1 = por %p3740_p3, %p3739_p8 }
 0x15a   : > { %p3735_p11 = pneg %p3734_p0 }
 0x15c   : > { %p3742_p9 = pnand %p3741_p1, %p3735_p11 }
 0x15e   : > { %3745 = shalt.err (!%p3742_p9)
}
 0x15f   : > { %3209 = dma.hbm_to_vmem [thread:$0]  (!%p4846_p4), %s4771_s17, 16, %s605_s6, [#allocation7]  }
 0x160   : > { %s4362_s16 = scalar_lea.hbm %s4769_s15, %s4089_s30  ;;  %s775_s5 = scalar_lea.vmem [#allocation18], %s4056_s3 }
 0x161   : > { %s782_s23 = sshll.u32 %s775_s5, 4  ;;  %s3746_s21 = scalar_lea.hbm %s4362_s16, 16  ;;  %s783_s23 = int_to_ptr.vmem [resolvable:$true] %s782_s23 }
 0x162   : > { %p3747_p9 = scmp.ne.s32.totalorder %s4362_s16, %s3746_s21  ;;  %p4847_p6 = scmp.ne.s32.totalorder %s4829_s24, 0 }
 0x163   : > { %s3751_s6 = scalar_lea.hbm %s4769_s15, 32  ;;  %p3752_p4 = scmp.lt.u32.totalorder %s4362_s16, %s4769_s15 }
 0x164   : > { %p3749_p7 = pnand %p3747_p9, %p4847_p6  ;;  %p3753_p2 = scmp.lt.u32.totalorder %s3751_s6, %s3746_s21 }
 0x165   : > { %p3755_p12 = scmp.lt.u32.totalorder %s3746_s21, %s4362_s16 }
 0x166   : > { %p3750_p5 = pneg %p3749_p7  ;;  %p3754_p13 = por %p3753_p2, %p3752_p4 }
 0x168   : > { %p3756_p10 = por %p3755_p12, %p3754_p13 }
 0x16a   : > { %p3757_p0 = pnand %p3756_p10, %p3750_p5 }
 0x16c   : > { %3760 = shalt.err (!%p3757_p0)
}
 0x16d   : > { %s3761_s3 = scalar_lea.vmem %s783_s23, 16  ;;  %s3874_s30 = smov [#allocation18]  }
 0x16e   : > { %p3762_p11 = scmp.ne.s32.totalorder %s783_s23, %s3761_s3  ;;  %s3766_s7 = sshll.u32 %s3874_s30, 4  ;;  %s3767_s7 = int_to_ptr.vmem [resolvable:$false] %s3766_s7 }
 0x16f   : > { %s3768_s18 = scalar_lea.vmem %s3767_s7, 32  ;;  %p3769_p1 = scmp.lt.s32.totalorder %s783_s23, %s3767_s7 }
 0x170   : > { %p3764_p8 = pnand %p3762_p11, %p4847_p6  ;;  %p3770_p9 = scmp.lt.s32.totalorder %s3768_s18, %s3761_s3 }
 0x172   : > { %p3765_p3 = pneg %p3764_p8  ;;  %p3771_p7 = por %p3770_p9, %p3769_p1 }
 0x174   : > { %p3772_p2 = pnand %p3771_p7, %p3765_p3 }
 0x176   : > { %3775 = shalt.err (!%p3772_p2)
}
 0x177   : > { %p4848_p4 = scmp.ne.s32.totalorder %s4824_s26, 0  ;;  %p4849_p5 = scmp.ne.s32.totalorder %s4822_s29, 0 }
 0x178   : > { %p4850_p6 = scmp.eq.s32.totalorder (!%p4849_p5), %s4012_s2, 0 }
 0x179   : > { %3234 = dma.hbm_to_vmem [thread:$0]  (!%p4848_p4), %s4362_s16, 16, %s783_s23, %s4100_s4  }
 0x17a   : > { %791 = sbr.rel (%p4849_p5) target bundleno = 3912 (0xf48), region = 100 }
 0x181   : > { %3819 = dma.done.wait (%p4850_p6), [#allocation4], 256   ;;  %p4851_p13 = pmov %p4850_p6 }
 0x182   : > { %p4852_p12 = pmov %p4850_p6 }
 0x183   : > { %3821 = vsyncadd (%p4851_p13), [#allocation4], 4294967040 }
 0x184   : > { %3823 = dma.done.wait (%p4852_p12), [#allocation7], 144   ;;  %p4853_p10 = pmov %p4850_p6 }
 0x185   : > { %p4854_p0 = pmov %p4850_p6 }
 0x186   : > { %3825 = vsyncadd (%p4853_p10), [#allocation7], 4294967152 }
 0x187   : > { %3827 = dma.done.wait (%p4854_p0), [#allocation10], 16   ;;  %p4855_p11 = pmov %p4854_p0 }
 0x188   : > { %s4856_s4 = sld [smem:[#allocation30_spill]]  ;;  %s809_s29 = sand.u32 1, %s4012_s2  }
 0x189   : > { %3829 = vsyncadd (%p4855_p11), [#allocation10], 4294967280  ;;  %s4399_s26 = sand.u32 1, %s3848_s22   ;;  %s810_s24 = scalar_lea.sflag [#allocation4], %s809_s29 }
 0x18a   : > { %s812_s10 = scalar_lea.vmem [#allocation11], %s4399_s26 }
 0x18e   : > { %p4857_p8 = scmp.ne.s32.totalorder %s4856_s4, 0 }
 0x190   : > { %3831 = dma.done.wait (%p4857_p8), %s810_s24, 128  }
 0x191   : > { %3833 = vsyncadd (%p4857_p8), %s810_s24, 4294967168  ;;  %p4858_p3 = pmov %p4854_p0 }
 0x192   : > { %p4859_p1 = pmov %p4854_p0 }
 0x193   : > { %3835 = dma.done.wait (%p4858_p3), [#allocation7], 16  }
 0x194   : > { %3837 = vsyncadd (%p4859_p1), [#allocation7], 4294967280  ;;  %p971_p9 = scmp.lt.s32.totalorder %s4012_s2, 1  ;;  %s4860_s3 = sld [smem:[#allocation35_spill]] }
 0x195   : > { %s4861_s4 = sld [smem:[#allocation37_spill]]  ;;  %s4862_s23 = sld [smem:[#allocation41_spill]] }
 0x196   : > { %s972_s1 = scalar_select %p971_p9, %s4012_s2, 1 }
 0x197   : > { %s4863_s27 = sld [smem:[#allocation42_spill]]  ;;  %p4864_p7 = scmp.ne.s32.totalorder %s4012_s2, 0 }
 0x198   : > { %s2950_s19 = sshll.u32 %s972_s1, 4  ;;  %s2953_s6 = sshll.u32 %s972_s1, 5  ;;  %v996_v0 = vld [vmem:[#allocation3] sm:$0xff] (!%p4864_p7)  ;;  %vm1000_vm0 = vcmask (!%p4864_p7), 261120   ;;  %v997_v1 = vld [vmem:[#allocation3 + $0x8] sm:$0xff] (!%p4864_p7) }
 0x199   : > { %995 = sbr.rel (%p4864_p7) target bundleno = 727 (0x2d7), region = 156  ;;  %v1001_v2 = vsel (!%p4864_p7), %vm1000_vm0, %v996_v0, 0.0  ;;  %v1004_v3 = vsel (!%p4864_p7), %vm1000_vm0, %v997_v1, 0.0  ;;  %v2889_v21 = vld [vmem:[#allocation8] ss:$0 sm:$0xff] (!%p4864_p7) }
 0x19a   : > { %s4422_s30 = scalar_lea.vmem %s4860_s3, %s2950_s19  ;;  %1002 = vadd.xlane.f32.xlu0 (!%p4864_p7), %v1001_v2  ;;  %v2890_v23 = vld [vmem:[#allocation9] ss:$0 sm:$0xff] (!%p4864_p7) }
 0x19b   : > { %s4427_s29 = scalar_lea.vmem %s4861_s4, %s2950_s19  ;;  %s4432_s5 = scalar_lea.vmem %s4862_s23, %s2950_s19 }
 0x19d   : > { %s4437_s20 = scalar_lea.vmem %s4863_s27, %s2953_s6 }
 0x19e   : > { %1005 = vadd.xlane.f32.xlu0 (!%p4864_p7), %v1004_v3 }
 0x227   : > { %v1003_v4 = vpop.xlane.xlu0 %1002 }
 0x228   : > { %v1008_v5 = vmul.f32 0.03125, %v1003_v4 }
 0x22a   : > { %v1010_v6 = vsub.f32 %v996_v0, %v1008_v5 }
 0x22b   : > { %v1006_v7 = vpop.xlane.xlu0 %1005 }
 0x22c   : > { %v1009_v8 = vmul.f32 0.03125, %v1006_v7  ;;  %v1012_v9 = vmul.f32 %v1010_v6, %v1010_v6 }
 0x22e   : > { %v1011_v10 = vsub.f32 %v997_v1, %v1009_v8  ;;  %v1014_v11 = vsel %vm1000_vm0, %v1012_v9, 0.0 }
 0x22f   : > { %1015 = vadd.xlane.f32.xlu1 %v1014_v11 }
 0x230   : > { %v1013_v12 = vmul.f32 %v1011_v10, %v1011_v10 }
 0x232   : > { %v1017_v13 = vsel %vm1000_vm0, %v1013_v12, 0.0 }
 0x233   : > { %1018 = vadd.xlane.f32.xlu1 %v1017_v13 }
 0x2bc   : > { %v1016_v14 = vpop.xlane.xlu1 %1015 }
 0x2bd   : > { %v1020_v15 = vmul.f32 0.03125, %v1016_v14 }
 0x2bf   : > { %v1022_v16 = vadd.f32 1e-05, %v1020_v15 }
 0x2c0   : > { %v1019_v17 = vpop.xlane.xlu1 %1018 }
 0x2c1   : > { %3302 = vrsqrt.f32 %v1022_v16  ;;  %v1021_v18 = vmul.f32 0.03125, %v1019_v17 }
 0x2c3   : > { %v1023_v19 = vadd.f32 1e-05, %v1021_v18 }
 0x2c5   : > { %3304 = vrsqrt.f32 %v1023_v19 }
 0x2cb   : > { %v3303_v20 = vpop.eup %3302 }
 0x2cc   : > { %v1026_v22 = vmul.f32 %v3303_v20, %v1010_v6 }
 0x2ce   : > { %v1034_v24 = vmul.f32 %v2889_v21, %v1026_v22 }
 0x2cf   : > { %v3305_v25 = vpop.eup %3304 }
 0x2d0   : > { %v1042_v26 = vadd.f32 %v2890_v23, %v1034_v24  ;;  %v1027_v27 = vmul.f32 %v3305_v25, %v1011_v10 }
 0x2d2   : > { %1044 = vst.msk [vmem:[#allocation2] sm:$0xff] %vm1000_vm0, %v1042_v26  ;;  %v1035_v28 = vmul.f32 %v2889_v21, %v1027_v27 }
 0x2d4   : > { %v1043_v29 = vadd.f32 %v2890_v23, %v1035_v28 }
 0x2d6   : > { %1045 = vst.msk [vmem:[#allocation2 + $0x8] sm:$0xff] %vm1000_vm0, %v1043_v29 }
 0x2d7 PF: > { %v3336_v30 = vld [vmem:[%s4422_s30] sm:$0xff]   ;;  %v3875_v31 = vmov 0.0   ;;  %v3337_v32 = vld [vmem:[%s4422_s30 + $0x8] sm:$0xff]   ;;  %vm3876_vm1 = vmmov 0   ;;  %vm1072_vm2 = vcmask 261120   ;;  %s3877_s27 = smov 104  }
 0x2d8   : > { %3006 = vmatprep.subr.bf16.mxu0 %v3875_v31  ;;  %3014 = vmatprep.subr.bf16.mxu1 %v3875_v31  ;;  %v2891_v36 = vld [vmem:[%s812_s10] ss:$0 sm:$0xff]  ;;  %s3878_s9 = smov 120   ;;  %s3879_s16 = smov 96   ;;  %vm1204_vm3 = vcmask 64512   ;;  %vm1695_vm4 = vcmask 1043456  }
 0x2d9   : > { %3007 = vmatpush3.bf16.msra.mxu0 %v3336_v30  ;;  %3010 = vmatprep.mubr.msk.bf16.mxu0 %vm3876_vm1, %v3875_v31  ;;  %v4453_v33 = vld [vmem:[#allocation2] sm:$0xff]  ;;  %s3880_s23 = smov 112   ;;  %s3881_s10 = smov 64   ;;  %vm2101_vm5 = vcmask 130048   ;;  %vm2104_vm6 = vcmask 195584   ;;  %vm2348_vm7 = vcmask 523264  }
 0x2da   : > { %3008 = vmatprep.subr.bf16.mxu0 %v3875_v31  ;;  %3016 = vmatprep.mubr.msk.bf16.mxu1 %vm3876_vm1, %v3875_v31  ;;  %v2895_v17 = vld [vmem:[#allocation6] ss:$0 sm:$0xff]  ;;  %v2896_v22 = vld [vmem:[#allocation6 + $0x1] ss:$0 sm:$0xff]  ;;  %s3882_s21 = smov 8   ;;  %s3883_s1 = smov 16  }
 0x2db   : > { %s3884_s19 = smov 24   ;;  %s4865_s6 = scalar_lea.vmem [#allocation12], %s4399_s26 }
 0x2dc   : > { %s4866_s12 = scalar_lea.vmem [#allocation13], %s4399_s26  ;;  %s4868_s0 = scalar_lea.vmem [#allocation15], %s4399_s26 }
 0x2dd   : > { %v4455_v34 = vld [vmem:[#allocation2 + $0x8] sm:$0xff]  ;;  %3009 = vmatpush3.bf16.msra.mxu0 %v3337_v32  ;;  %v2897_v32 = vld [vmem:[#allocation6 + $0x2] ss:$0 sm:$0xff]  ;;  %s4870_s3 = scalar_lea.vmem [#allocation17], %s4399_s26  ;;  %s4871_s30 = scalar_lea.vmem [#allocation18], %s4399_s26 }
 0x2de   : > { %v1048_v35 = vpack.c.bf16 %v4455_v34, %v4453_v33  ;;  %3020 = vmatprep.subr.bf16.mxu0 %v3875_v31  ;;  %p2937_p2 = scmp.ne.s32.totalorder %s4012_s2, 1 }
 0x2df   : > { %s4872_s4 = sld [smem:[#allocation43_spill]] (!%p2937_p2)  ;;  %vm3886_vm8 = vmmov (!%p2937_p2), 0   ;;  %vm2463_vm9 = vcmask (!%p2937_p2), 1041409  }
 0x2e0   : > { %3011 = vmatmul.mubr.msk.bf16.vlgmr.msra.gmra.mrb[0].mxu0 %vm1072_vm2, %v1048_v35  ;;  %v2898_v35 = vld [vmem:[#allocation6 + $0x3] ss:$0 sm:$0xff] }
 0x2e1   : > { %3022 = vmatprep.mubr.msk.bf16.mxu0 %vm3876_vm1, %v3875_v31 }
 0x3b3   : > { %v1110_v37 = vpop.f32.mrb[0].mxu0 }
 0x3b4   : > { %v3012_v38 = vpop.f32.mrb[1].mxu0  ;;  %v1111_v40 = vadd.f32 %v2891_v36, %v1110_v37 }
 0x3b5   : > { %v1113_v39 = vpop.f32.mrb[2].mxu0 }
 0x3b6   : > { %v1114_v41 = vadd.f32 %v2891_v36, %v1113_v39  ;;  %v3013_v42 = vpop.f32.mrb[3].mxu0  ;;  %v1137_v44 = vpack.c.bf16 %v1111_v40, %v1111_v40 }
 0x3b8   : > { %v3316_v43 = vpack.i.bf16 %v1114_v41, %v1111_v40  ;;  %v1138_v45 = vpack.c.bf16 %v1114_v41, %v1114_v41 }
 0x3ba   : > { %3317 = vrot.lane.b32.xlu1 %v3316_v43, %s3877_s27  ;;  %3307 = vrot.lane.b32.xlu0 %v3316_v43, %s3878_s9  ;;  %s4873_s9 = sld [smem:[#allocation44_spill]] (!%p2937_p2) }
 0x3be   : > { %1202 = vrot.lane.b32.xlu1 %v1137_v44, %s3879_s16  ;;  %3312 = vrot.lane.b32.xlu0 %v3316_v43, %s3880_s23 }
 0x3c2   : > { %1252 = vrot.lane.b32.xlu0 %v1138_v45, %s3879_s16 }
 0x42c   : > { %v3318_v46 = vpop.permute.xlu1 %3317  ;;  %v3308_v47 = vpop.permute.xlu0 %3307 }
 0x42d   : > { %v3310_v48 = vunpack.i.h.bf16 %v3308_v47  ;;  %v3309_v49 = vunpack.i.l.bf16 %v3308_v47  ;;  %v3319_v57 = vunpack.i.l.bf16 %v3318_v46  ;;  %v3320_v60 = vunpack.i.h.bf16 %v3318_v46 }
 0x42f   : > { %v4470_v50 = vpack.c.bf16 %v3310_v48, %v3310_v48  ;;  %v4472_v51 = vpack.c.bf16 %v3309_v49, %v3309_v49  ;;  %v4489_v63 = vpack.c.bf16 %v3319_v57, %v3319_v57  ;;  %v4492_v0 = vpack.c.bf16 %v3320_v60, %v3320_v60  ;;  %v2899_v48 = vld [vmem:[#allocation6 + $0x4] ss:$0 sm:$0xff]  ;;  %v2900_v49 = vld [vmem:[#allocation6 + $0x5] ss:$0 sm:$0xff] }
 0x430   : > { %v1203_v52 = vpop.permute.xlu1 %1202  ;;  %v3313_v53 = vpop.permute.xlu0 %3312 }
 0x431   : > { %v3315_v54 = vunpack.i.h.bf16 %v3313_v53  ;;  %v3314_v55 = vunpack.i.l.bf16 %v3313_v53  ;;  %1301 = vrot.lane.b32.xlu1 %v4472_v51, %s3879_s16  ;;  %1350 = vrot.lane.b32.xlu0 %v4470_v50, %s3879_s16  ;;  %v1209_v56 = vsel %vm1204_vm3, %v1203_v52, 0 }
 0x432   : > { %3015 = vmatpush3.bf16.xpose.msra.mxu1 %v1209_v56 }
 0x433   : > { %v4479_v58 = vpack.c.bf16 %v3315_v54, %v3315_v54  ;;  %v4481_v59 = vpack.c.bf16 %v3314_v55, %v3314_v55  ;;  %3026 = vmatprep.subr.bf16.mxu1 %v3875_v31 }
 0x434   : > { %v1253_v61 = vpop.permute.xlu0 %1252 }
 0x435   : > { %v1258_v62 = vsel %vm1204_vm3, %v1253_v61, 0  ;;  %1399 = vrot.lane.b32.xlu1 %v4481_v59, %s3879_s16  ;;  %1448 = vrot.lane.b32.xlu0 %v4479_v58, %s3879_s16 }
 0x436   : > { %3021 = vmatpush3.bf16.xpose.msra.mxu0 %v1258_v62 }
 0x437   : > { %3032 = vmatprep.subr.bf16.mxu0 %v3875_v31 }
 0x439   : > { %3017 = vmatmul.mubr.msk.bf16.vlgmr.msra.gmra.mrb[0].mxu1 %vm1204_vm3, %v1137_v44  ;;  %1497 = vrot.lane.b32.xlu1 %v4489_v63, %s3879_s16 }
 0x43a   : > { %1546 = vrot.lane.b32.xlu0 %v4492_v0, %s3879_s16  ;;  %3028 = vmatprep.mubr.msk.bf16.mxu1 %vm3876_vm1, %v3875_v31 }
 0x43d   : > { %1739 = vrot.lane.b32.xlu1 %v1138_v45, %s3881_s10  ;;  %3023 = vmatmul.mubr.msk.bf16.vlgmr.msra.gmra.mrb[4].mxu0 %vm1204_vm3, %v1138_v45 }
 0x43e   : > { %1690 = vrot.lane.b32.xlu0 %v1137_v44, %s3881_s10  ;;  %3034 = vmatprep.mubr.msk.bf16.mxu0 %vm3876_vm1, %v3875_v31 }
 0x4a3   : > { %v1302_v1 = vpop.permute.xlu1 %1301  ;;  %v1351_v2 = vpop.permute.xlu0 %1350 }
 0x4a4   : > { %v1307_v3 = vsel %vm1204_vm3, %v1302_v1, 0  ;;  %v1356_v4 = vsel %vm1204_vm3, %v1351_v2, 0 }
 0x4a5   : > { %3027 = vmatpush3.bf16.xpose.msra.mxu1 %v1307_v3  ;;  %3033 = vmatpush3.bf16.xpose.msra.mxu0 %v1356_v4  ;;  %v2901_v4 = vld [vmem:[#allocation6 + $0x6] ss:$0 sm:$0xff] }
 0x4a6   : > { %3038 = vmatprep.subr.bf16.mxu1 %v3875_v31  ;;  %3044 = vmatprep.subr.bf16.mxu0 %v3875_v31 }
 0x4a7   : > { %v1400_v5 = vpop.permute.xlu1 %1399  ;;  %v1449_v6 = vpop.permute.xlu0 %1448 }
 0x4a8   : > { %v1405_v7 = vsel %vm1204_vm3, %v1400_v5, 0  ;;  %v1454_v8 = vsel %vm1204_vm3, %v1449_v6, 0  ;;  %v2902_v5 = vld [vmem:[#allocation6 + $0x7] ss:$0 sm:$0xff] }
 0x4ab   : > { %v1498_v9 = vpop.permute.xlu1 %1497 }
 0x4ac   : > { %3029 = vmatmul.mubr.msk.bf16.vlgmr.msra.gmra.mrb[4].mxu1 %vm1204_vm3, %v4472_v51  ;;  %3035 = vmatmul.mubr.msk.bf16.vlgmr.msra.gmra.mrb[8].mxu0 %vm1204_vm3, %v4470_v50  ;;  %v1547_v10 = vpop.permute.xlu0 %1546  ;;  %v1503_v11 = vsel %vm1204_vm3, %v1498_v9, 0 }
 0x4ad   : > { %3039 = vmatpush3.bf16.xpose.msra.mxu1 %v1405_v7  ;;  %3045 = vmatpush3.bf16.xpose.msra.mxu0 %v1454_v8  ;;  %v1552_v12 = vsel %vm1204_vm3, %v1547_v10, 0 }
 0x4ae   : > { %3040 = vmatprep.mubr.msk.bf16.mxu1 %vm3876_vm1, %v3875_v31  ;;  %3046 = vmatprep.mubr.msk.bf16.mxu0 %vm3876_vm1, %v3875_v31 }
 0x4af   : > { %3050 = vmatprep.subr.bf16.mxu1 %v3875_v31  ;;  %3056 = vmatprep.subr.bf16.mxu0 %v3875_v31  ;;  %v1740_v13 = vpop.permute.xlu1 %1739 }
 0x4b0   : > { %v1691_v14 = vpop.permute.xlu0 %1690  ;;  %v1745_v15 = vsel %vm1695_vm4, %v1740_v13, 0 }
 0x4b1   : > { %v1697_v16 = vsel %vm1695_vm4, %v1691_v14, 0 }
 0x4b4   : > { %3041 = vmatmul.mubr.msk.bf16.vlgmr.msra.gmra.mrb[8].mxu1 %vm1204_vm3, %v4481_v59  ;;  %3047 = vmatmul.mubr.msk.bf16.vlgmr.msra.gmra.mrb[12].mxu0 %vm1204_vm3, %v4479_v58 }
 0x4b5   : > { %3051 = vmatpush3.bf16.xpose.msra.mxu1 %v1503_v11  ;;  %3057 = vmatpush3.bf16.xpose.msra.mxu0 %v1552_v12 }
 0x4b6   : > { %3052 = vmatprep.mubr.msk.bf16.mxu1 %vm3876_vm1, %v3875_v31  ;;  %3058 = vmatprep.mubr.msk.bf16.mxu0 %vm3876_vm1, %v3875_v31 }
 0x4b7   : > { %3062 = vmatprep.subr.bf16.mxu1 %v3875_v31  ;;  %3068 = vmatprep.subr.bf16.mxu0 %v3875_v31 }
 0x4bc   : > { %3053 = vmatmul.mubr.msk.bf16.vlgmr.msra.gmra.mrb[12].mxu1 %vm1204_vm3, %v4489_v63  ;;  %3059 = vmatmul.mubr.msk.bf16.vlgmr.msra.gmra.mrb[16].mxu0 %vm1204_vm3, %v4492_v0 }
 0x4bd   : > { %3063 = vmatpush3.bf16.msra.mxu1 %v1697_v16  ;;  %3069 = vmatpush3.bf16.msra.mxu0 %v1745_v15 }
 0x4be   : > { %3064 = vmatprep.mubr.msk.bf16.mxu1 %vm3876_vm1, %v3875_v31  ;;  %3070 = vmatprep.mubr.msk.bf16.mxu0 %vm3876_vm1, %v3875_v31 }
 0x4bf   : > { %3074 = vmatprep.subr.bf16.mxu1 %v3875_v31  ;;  %3080 = vmatprep.subr.bf16.mxu0 %v3875_v31 }
 0x50c   : > { %v1245_v18 = vpop.f32.mrb[0].mxu1 }
 0x50d   : > { %v4546_v19 = vadd.f32 %v2895_v17, %v1245_v18  ;;  %v3018_v20 = vpop.f32.mrb[1].mxu1 }
 0x50e   : > { %v1248_v21 = vpop.f32.mrb[2].mxu1 }
 0x50f   : > { %v3019_v23 = vpop.f32.mrb[3].mxu1  ;;  %v1594_v24 = vsel %vm1204_vm3, %v4546_v19, -inf }
 0x510   : > { %1595 = vmax.xlane.f32.xlu1 %v1594_v24  ;;  %v1294_v25 = vpop.f32.mrb[4].mxu0 }
 0x511   : > { %v1295_v26 = vadd.f32 %v2896_v22, %v1294_v25  ;;  %v3024_v27 = vpop.f32.mrb[5].mxu0 }
 0x512   : > { %v1297_v28 = vpop.f32.mrb[6].mxu0 }
 0x513   : > { %v3025_v29 = vpop.f32.mrb[7].mxu0  ;;  %v1597_v30 = vsel %vm1204_vm3, %v1295_v26, -inf }
 0x514   : > { %1598 = vmax.xlane.f32.xlu0 %v1597_v30 }
 0x57f   : > { %v1343_v36 = vpop.f32.mrb[4].mxu1  ;;  %v1392_v37 = vpop.f32.mrb[8].mxu0 }
 0x580   : > { %v4551_v38 = vadd.f32 %v2897_v32, %v1343_v36  ;;  %v4553_v39 = vadd.f32 %v2898_v35, %v1392_v37  ;;  %v3030_v40 = vpop.f32.mrb[5].mxu1  ;;  %v3036_v41 = vpop.f32.mrb[9].mxu0 }
 0x581   : > { %v1346_v42 = vpop.f32.mrb[6].mxu1  ;;  %v1395_v43 = vpop.f32.mrb[10].mxu0 }
 0x582   : > { %v3031_v44 = vpop.f32.mrb[7].mxu1  ;;  %v3037_v45 = vpop.f32.mrb[11].mxu0  ;;  %v1600_v46 = vsel %vm1204_vm3, %v4551_v38, -inf  ;;  %v1603_v47 = vsel %vm1204_vm3, %v4553_v39, -inf }
 0x583   : > { %1601 = vmax.xlane.f32.xlu0 %v1600_v46  ;;  %1604 = vmax.xlane.f32.xlu1 %v1603_v47 }
 0x587   : > { %v1441_v52 = vpop.f32.mrb[8].mxu1  ;;  %v1490_v53 = vpop.f32.mrb[12].mxu0 }
 0x588   : > { %v4559_v54 = vadd.f32 %v2899_v48, %v1441_v52  ;;  %v1491_v55 = vadd.f32 %v2900_v49, %v1490_v53  ;;  %v3042_v56 = vpop.f32.mrb[9].mxu1  ;;  %v3048_v57 = vpop.f32.mrb[13].mxu0 }
 0x589   : > { %v1444_v60 = vpop.f32.mrb[10].mxu1  ;;  %v1493_v61 = vpop.f32.mrb[14].mxu0 }
 0x58a   : > { %v3043_v62 = vpop.f32.mrb[11].mxu1  ;;  %v3049_v1 = vpop.f32.mrb[15].mxu0  ;;  %v1606_v2 = vsel %vm1204_vm3, %v4559_v54, -inf  ;;  %v1609_v3 = vsel %vm1204_vm3, %v1491_v55, -inf }
 0x58b   : > { %1607 = vmax.xlane.f32.xlu0 %v1606_v2  ;;  %1610 = vmax.xlane.f32.xlu1 %v1609_v3 }
 0x58f   : > { %v1539_v6 = vpop.f32.mrb[12].mxu1  ;;  %v1588_v7 = vpop.f32.mrb[16].mxu0 }
 0x590   : > { %v4564_v8 = vadd.f32 %v2901_v4, %v1539_v6  ;;  %v1589_v9 = vadd.f32 %v2902_v5, %v1588_v7  ;;  %v3054_v10 = vpop.f32.mrb[13].mxu1  ;;  %v3060_v11 = vpop.f32.mrb[17].mxu0 }
 0x591   : > { %v1542_v12 = vpop.f32.mrb[14].mxu1  ;;  %v1591_v13 = vpop.f32.mrb[18].mxu0 }
 0x592   : > { %v3055_v14 = vpop.f32.mrb[15].mxu1  ;;  %v3061_v15 = vpop.f32.mrb[19].mxu0  ;;  %v1612_v16 = vsel %vm1204_vm3, %v4564_v8, -inf  ;;  %v1615_v17 = vsel %vm1204_vm3, %v1589_v9, -inf }
 0x593   : > { %1613 = vmax.xlane.f32.xlu0 %v1612_v16  ;;  %1616 = vmax.xlane.f32.xlu1 %v1615_v17 }
 0x59d   : > { %v1596_v18 = vpop.xlane.xlu1 %1595 }
 0x59e   : > { %v1618_v21 = vsub.f32 %v4546_v19, %v1596_v18 }
 0x5a0   : > { %v1626_v23 = vmul.f32 1.442695, %v1618_v21 }
 0x5a1   : > { %v1599_v20 = vpop.xlane.xlu0 %1598 }
 0x5a2   : > { %v1619_v22 = vsub.f32 %v1295_v26, %v1599_v20  ;;  %3346 = vpow2.f32 %v1626_v23 }
 0x5a4   : > { %1787 = vrot.lane.b32.xlu1 %v4472_v51, %s3881_s10  ;;  %v1628_v24 = vmul.f32 1.442695, %v1619_v22 }
 0x5a6   : > { %3348 = vpow2.f32 %v1628_v24 }
 0x5a9   : > { %1835 = vrot.lane.b32.xlu0 %v4470_v50, %s3881_s10 }
 0x5ac   : > { %v3347_v25 = vpop.eup %3346 }
 0x5ad   : > { %v1642_v28 = vsel %vm1204_vm3, %v3347_v25, 0.0 }
 0x5b0   : > { %v3349_v27 = vpop.eup %3348 }
 0x5b1   : > { %v1645_v29 = vsel %vm1204_vm3, %v3349_v27, 0.0 }
 0x5c8   : > { %1643 = vadd.xlane.f32.xlu0 %v1642_v28  ;;  %1646 = vadd.xlane.f32.xlu1 %v1645_v29 }
 0x5d9   : > { %1883 = vrot.lane.b32.xlu1 %v4481_v59, %s3881_s10 }
 0x610   : > { %v1602_v50 = vpop.xlane.xlu0 %1601  ;;  %v1605_v51 = vpop.xlane.xlu1 %1604 }
 0x611   : > { %v1620_v19 = vsub.f32 %v4551_v38, %v1602_v50  ;;  %v1621_v26 = vsub.f32 %v4553_v39, %v1605_v51 }
 0x613   : > { %v1630_v30 = vmul.f32 1.442695, %v1620_v19  ;;  %v1632_v32 = vmul.f32 1.442695, %v1621_v26 }
 0x615   : > { %3350 = vpow2.f32 %v1630_v30 }
 0x616   : > { %3352 = vpow2.f32 %v1632_v32 }
 0x618   : > { %v1611_v35 = vpop.xlane.xlu1 %1610  ;;  %v1608_v48 = vpop.xlane.xlu0 %1607 }
 0x619   : > { %v1623_v36 = vsub.f32 %v1491_v55, %v1611_v35  ;;  %v1622_v49 = vsub.f32 %v4559_v54, %v1608_v48 }
 0x61b   : > { %v1636_v37 = vmul.f32 1.442695, %v1623_v36  ;;  %v1634_v53 = vmul.f32 1.442695, %v1622_v49 }
 0x61d   : > { %3354 = vpow2.f32 %v1636_v37 }
 0x61f   : > { %v4580_v40 = vpop.eup %3350 }
 0x620   : > { %v4582_v41 = vpop.eup %3352  ;;  %v1617_v42 = vpop.xlane.xlu1 %1616  ;;  %v1648_v59 = vsel %vm1204_vm3, %v4580_v40, 0.0 }
 0x621   : > { %v1625_v43 = vsub.f32 %v1589_v9, %v1617_v42  ;;  %1649 = vadd.xlane.f32.xlu0 %v1648_v59  ;;  %v1651_v38 = vsel %vm1204_vm3, %v4582_v41, 0.0  ;;  %v1614_v52 = vpop.xlane.xlu0 %1613 }
 0x622   : > { %1652 = vadd.xlane.f32.xlu1 %v1651_v38  ;;  %v1624_v55 = vsub.f32 %v4564_v8, %v1614_v52 }
 0x623   : > { %v1640_v39 = vmul.f32 1.442695, %v1625_v43 }
 0x624   : > { %v1638_v56 = vmul.f32 1.442695, %v1624_v55  ;;  %v1788_v60 = vpop.permute.xlu1 %1787 }
 0x625   : > { %3356 = vpow2.f32 %v1640_v39  ;;  %v1836_v57 = vpop.permute.xlu0 %1835  ;;  %v1793_v8 = vsel %vm1695_vm4, %v1788_v60, 0 }
 0x626   : > { %3358 = vpow2.f32 %v1634_v53  ;;  %v1841_v9 = vsel %vm1695_vm4, %v1836_v57, 0 }
 0x627   : > { %v4588_v44 = vpop.eup %3354  ;;  %3360 = vpow2.f32 %v1638_v56 }
 0x628   : > { %v1657_v45 = vsel %vm1204_vm3, %v4588_v44, 0.0 }
 0x629   : > { %1658 = vadd.xlane.f32.xlu1 %v1657_v45 }
 0x62f   : > { %v4592_v46 = vpop.eup %3356 }
 0x630   : > { %v1663_v47 = vsel %vm1204_vm3, %v4592_v46, 0.0  ;;  %v4602_v61 = vpop.eup %3358 }
 0x631   : > { %1664 = vadd.xlane.f32.xlu1 %v1663_v47  ;;  %v4606_v54 = vpop.eup %3360 }
 0x637   : > { %1931 = vrot.lane.b32.xlu0 %v4479_v58, %s3881_s10  ;;  %v1654_v58 = vsel %vm1204_vm3, %v4602_v61, 0.0 }
 0x642   : > { %1979 = vrot.lane.b32.xlu1 %v4489_v63, %s3881_s10  ;;  %v1660_v63 = vsel %vm1204_vm3, %v4606_v54, 0.0 }
 0x655   : > { %v1644_v62 = vpop.xlane.xlu0 %1643  ;;  %v1647_v1 = vpop.xlane.xlu1 %1646 }
 0x656   : > { %3362 = vrcp.f32 %v1644_v62  ;;  %1655 = vadd.xlane.f32.xlu0 %v1654_v58 }
 0x657   : > { %3364 = vrcp.f32 %v1647_v1 }
 0x659   : > { %v1884_v10 = vpop.permute.xlu1 %1883 }
 0x65a   : > { %1661 = vadd.xlane.f32.xlu0 %v1660_v63  ;;  %v1889_v22 = vsel %vm1695_vm4, %v1884_v10, 0 }
 0x660   : > { %v3363_v2 = vpop.eup %3362 }
 0x661   : > { %v3365_v3 = vpop.eup %3364  ;;  %v1674_v4 = vmul.f32 %v3363_v2, %v3347_v25  ;;  %v3338_v2 = vld [vmem:[%s4427_s29] sm:$0xff]  }
 0x662   : > { %v1675_v5 = vmul.f32 %v3365_v3, %v3349_v27 }
 0x663   : > { %v1682_v6 = vpack.c.bf16 %v1674_v4, %v1674_v4 }
 0x664   : > { %v1683_v7 = vpack.c.bf16 %v1675_v5, %v1675_v5 }
 0x665   : > { %3065 = vmatmul.mubr.msk.bf16.vlgmr.msra.gmra.mrb[16].mxu1 %vm1204_vm3, %v1682_v6 }
 0x666   : > { %3071 = vmatmul.mubr.msk.bf16.vlgmr.msra.gmra.mrb[20].mxu0 %vm1204_vm3, %v1683_v7  ;;  %3075 = vmatpush3.bf16.msra.mxu1 %v1793_v8  ;;  %v3339_v8 = vld [vmem:[%s4427_s29 + $0x8] sm:$0xff]  }
 0x667   : > { %3081 = vmatpush3.bf16.msra.mxu0 %v1841_v9  ;;  %3076 = vmatprep.mubr.msk.bf16.mxu1 %vm3876_vm1, %v3875_v31 }
 0x668   : > { %3082 = vmatprep.mubr.msk.bf16.mxu0 %vm3876_vm1, %v3875_v31  ;;  %3086 = vmatprep.subr.bf16.mxu1 %v3875_v31 }
 0x669   : > { %3092 = vmatprep.subr.bf16.mxu0 %v3875_v31 }
 0x670   : > { %2027 = vrot.lane.b32.xlu0 %v4492_v0, %s3881_s10 }
 0x6ae   : > { %v1650_v11 = vpop.xlane.xlu0 %1649 }
 0x6af   : > { %3366 = vrcp.f32 %v1650_v11  ;;  %v1653_v12 = vpop.xlane.xlu1 %1652 }
 0x6b0   : > { %3368 = vrcp.f32 %v1653_v12 }
 0x6b2   : > { %v1932_v18 = vpop.permute.xlu0 %1931 }
 0x6b3   : > { %v1937_v0 = vsel %vm1695_vm4, %v1932_v18, 0 }
 0x6b6   : > { %v1659_v13 = vpop.xlane.xlu1 %1658 }
 0x6b7   : > { %3370 = vrcp.f32 %v1659_v13 }
 0x6b9   : > { %v3367_v14 = vpop.eup %3366 }
 0x6ba   : > { %v3369_v15 = vpop.eup %3368  ;;  %v1676_v16 = vmul.f32 %v3367_v14, %v4580_v40 }
 0x6bb   : > { %v1677_v17 = vmul.f32 %v3369_v15, %v4582_v41 }
 0x6bc   : > { %v1684_v20 = vpack.c.bf16 %v1676_v16, %v1676_v16 }
 0x6bd   : > { %v1685_v21 = vpack.c.bf16 %v1677_v17, %v1677_v17 }
 0x6be   : > { %3077 = vmatmul.mubr.msk.bf16.vlgmr.msra.gmra.mrb[20].mxu1 %vm1204_vm3, %v1684_v20  ;;  %v1665_v27 = vpop.xlane.xlu1 %1664 }
 0x6bf   : > { %3083 = vmatmul.mubr.msk.bf16.vlgmr.msra.gmra.mrb[24].mxu0 %vm1204_vm3, %v1685_v21  ;;  %3087 = vmatpush3.bf16.msra.mxu1 %v1889_v22  ;;  %3372 = vrcp.f32 %v1665_v27 }
 0x6c0   : > { %3093 = vmatpush3.bf16.msra.mxu0 %v1937_v0  ;;  %3094 = vmatprep.mubr.msk.bf16.mxu0 %vm3876_vm1, %v3875_v31 }
 0x6c1   : > { %3104 = vmatprep.subr.bf16.mxu0 %v3875_v31  ;;  %3088 = vmatprep.mubr.msk.bf16.mxu1 %vm3876_vm1, %v3875_v31  ;;  %v3371_v23 = vpop.eup %3370 }
 0x6c2   : > { %3098 = vmatprep.subr.bf16.mxu1 %v3875_v31  ;;  %v1679_v24 = vmul.f32 %v3371_v23, %v4588_v44  ;;  %v1980_v36 = vpop.permute.xlu1 %1979 }
 0x6c3   : > { %v1985_v41 = vsel %vm1695_vm4, %v1980_v36, 0 }
 0x6c4   : > { %v1687_v25 = vpack.c.bf16 %v1679_v24, %v1679_v24 }
 0x6c7   : > { %3095 = vmatmul.mubr.msk.bf16.vlgmr.msra.gmra.mrb[28].mxu0 %vm1204_vm3, %v1687_v25 }
 0x6c8   : > { %3106 = vmatprep.mubr.msk.bf16.mxu0 %vm3876_vm1, %v3875_v31 }
 0x6c9   : > { %v3373_v29 = vpop.eup %3372 }
 0x6ca   : > { %v1681_v51 = vmul.f32 %v3373_v29, %v4592_v46 }
 0x6cc   : > { %v1689_v32 = vpack.c.bf16 %v1681_v51, %v1681_v51 }
 0x6e3   : > { %v1656_v28 = vpop.xlane.xlu0 %1655 }
 0x6e4   : > { %3374 = vrcp.f32 %v1656_v28 }
 0x6e7   : > { %v1662_v50 = vpop.xlane.xlu0 %1661 }
 0x6e8   : > { %3376 = vrcp.f32 %v1662_v50 }
 0x6eb   : > { %v2028_v19 = vpop.permute.xlu0 %2027 }
 0x6ec   : > { %v2033_v26 = vsel %vm1695_vm4, %v2028_v19, 0 }
 0x6ed   : > { %3105 = vmatpush3.bf16.msra.mxu0 %v2033_v26 }
 0x6ee   : > { %v3375_v30 = vpop.eup %3374  ;;  %3118 = vmatprep.subr.bf16.mxu0 %v3875_v31 }
 0x6ef   : > { %v1678_v35 = vmul.f32 %v3375_v30, %v4602_v61 }
 0x6f0   : > { %3107 = vmatmul.mubr.msk.bf16.vlgmr.msra.gmra.mrb[32].mxu0 %vm1204_vm3, %v1689_v32  ;;  %v2919_v32 = vld [vmem:[%s4865_s6] ss:$0 sm:$0xff] }
 0x6f1   : > { %v1686_v37 = vpack.c.bf16 %v1678_v35, %v1678_v35  ;;  %3122 = vmatprep.mubr.msk.bf16.mxu0 %vm3876_vm1, %v3875_v31 }
 0x6f2   : > { %v3377_v40 = vpop.eup %3376 }
 0x6f3   : > { %3089 = vmatmul.mubr.msk.bf16.vlgmr.msra.gmra.mrb[24].mxu1 %vm1204_vm3, %v1686_v37  ;;  %v1680_v42 = vmul.f32 %v3377_v40, %v4606_v54 }
 0x6f4   : > { %3099 = vmatpush3.bf16.msra.mxu1 %v1985_v41  ;;  %3100 = vmatprep.mubr.msk.bf16.mxu1 %vm3876_vm1, %v3875_v31 }
 0x6f5   : > { %3110 = vmatprep.subr.bf16.mxu1 %v3875_v31  ;;  %v1688_v59 = vpack.c.bf16 %v1680_v42, %v1680_v42 }
 0x6fb   : > { %3101 = vmatmul.mubr.msk.bf16.vlgmr.msra.gmra.mrb[28].mxu1 %vm1204_vm3, %v1688_v59 }
 0x6fc   : > { %3114 = vmatprep.mubr.msk.bf16.mxu1 %vm3876_vm1, %v3875_v31  ;;  %3111 = vmatpush3.bf16.msra.mxu1 %v3338_v2  ;;  %v2923_v2 = vld [vmem:[%s4866_s12] ss:$0 sm:$0xff] }
 0x6fd   : > { %3112 = vmatprep.subr.bf16.mxu1 %v3875_v31 }
 0x700   : > { %3113 = vmatpush3.bf16.msra.mxu1 %v3339_v8 }
 0x701   : > { %3126 = vmatprep.subr.bf16.mxu1 %v3875_v31 }
 0x738   : > { %v1733_v43 = vpop.f32.mrb[16].mxu1 }
 0x739   : > { %v1781_v38 = vpop.f32.mrb[20].mxu0  ;;  %v3066_v39 = vpop.f32.mrb[17].mxu1 }
 0x73a   : > { %v3072_v44 = vpop.f32.mrb[21].mxu0  ;;  %v1736_v45 = vpop.f32.mrb[18].mxu1 }
 0x73b   : > { %v1784_v46 = vpop.f32.mrb[22].mxu0  ;;  %v3067_v47 = vpop.f32.mrb[19].mxu1 }
 0x73c   : > { %v3073_v48 = vpop.f32.mrb[23].mxu0 }
 0x791   : > { %v1829_v49 = vpop.f32.mrb[20].mxu1 }
 0x792   : > { %v1877_v52 = vpop.f32.mrb[24].mxu0  ;;  %v3078_v53 = vpop.f32.mrb[21].mxu1 }
 0x793   : > { %v3321_v55 = vpack.i.bf16 %v1877_v52, %v1829_v49  ;;  %v3084_v56 = vpop.f32.mrb[25].mxu0  ;;  %v1832_v57 = vpop.f32.mrb[22].mxu1 }
 0x794   : > { %v1880_v60 = vpop.f32.mrb[26].mxu0  ;;  %v3079_v61 = vpop.f32.mrb[23].mxu1  ;;  %v3341_v56 = vld [vmem:[%s4432_s5 + $0x8] sm:$0xff]  }
 0x795   : > { %3322 = vrot.lane.b32.xlu1 %v3321_v55, %s3882_s21  ;;  %v3085_v62 = vpop.f32.mrb[27].mxu0 }
 0x79a   : > { %v1973_v1 = vpop.f32.mrb[28].mxu0 }
 0x79b   : > { %v3096_v58 = vpop.f32.mrb[29].mxu0 }
 0x79c   : > { %v1976_v54 = vpop.f32.mrb[30].mxu0 }
 0x79d   : > { %v3097_v63 = vpop.f32.mrb[31].mxu0 }
 0x7c3   : > { %v2069_v3 = vpop.f32.mrb[32].mxu0 }
 0x7c4   : > { %v3108_v4 = vpop.f32.mrb[33].mxu0 }
 0x7c5   : > { %v2072_v5 = vpop.f32.mrb[34].mxu0 }
 0x7c6   : > { %v1925_v6 = vpop.f32.mrb[24].mxu1  ;;  %v3109_v7 = vpop.f32.mrb[35].mxu0 }
 0x7c7   : > { %v3326_v9 = vpack.i.bf16 %v1973_v1, %v1925_v6  ;;  %v3090_v10 = vpop.f32.mrb[25].mxu1 }
 0x7c8   : > { %v1928_v11 = vpop.f32.mrb[26].mxu1 }
 0x7c9   : > { %v3091_v12 = vpop.f32.mrb[27].mxu1  ;;  %3327 = vrot.lane.b32.xlu0 %v3326_v9, %s3883_s1  ;;  %v3342_v11 = vld [vmem:[%s4437_s20] sm:$0xff]   ;;  %s4874_s1 = sld [smem:[#allocation45_spill]] (!%p2937_p2) }
 0x7ca   : > { %v3343_v12 = vld [vmem:[%s4437_s20 + $0x8] sm:$0xff]  }
 0x7ce   : > { %v2021_v13 = vpop.f32.mrb[28].mxu1 }
 0x7cf   : > { %v3331_v14 = vpack.i.bf16 %v2069_v3, %v2021_v13  ;;  %v3102_v15 = vpop.f32.mrb[29].mxu1  ;;  %v3344_v13 = vld [vmem:[%s4437_s20 + $0x10] sm:$0xff]  }
 0x7d0   : > { %v2024_v16 = vpop.f32.mrb[30].mxu1  ;;  %v2925_v15 = vld [vmem:[%s4868_s0] ss:$0 sm:$0xff] }
 0x7d1   : > { %v3103_v17 = vpop.f32.mrb[31].mxu1  ;;  %3332 = vrot.lane.b32.xlu1 %v3331_v14, %s3884_s19  ;;  %v3345_v14 = vld [vmem:[%s4437_s20 + $0x18] sm:$0xff]   ;;  %s4869_s20 = scalar_lea.vmem [#allocation16], %s4399_s26 }
 0x807   : > { %v3323_v18 = vpop.permute.xlu1 %3322 }
 0x808   : > { %v3325_v21 = vunpack.i.h.bf16 %v3323_v18  ;;  %v3324_v22 = vunpack.i.l.bf16 %v3323_v18 }
 0x80a   : > { %v2100_v25 = vsel %vm1204_vm3, %v1781_v38, %v3325_v21  ;;  %v2099_v27 = vsel %vm1204_vm3, %v1733_v43, %v3324_v22 }
 0x83b   : > { %v3328_v20 = vpop.permute.xlu0 %3327 }
 0x83c   : > { %v3330_v0 = vunpack.i.h.bf16 %v3328_v20  ;;  %v3329_v23 = vunpack.i.l.bf16 %v3328_v20 }
 0x83e   : > { %v2103_v50 = vsel %vm2101_vm5, %v2100_v25, %v3330_v0  ;;  %v2102_v51 = vsel %vm2101_vm5, %v2099_v27, %v3329_v23 }
 0x843   : > { %v3333_v24 = vpop.permute.xlu1 %3332 }
 0x844   : > { %v3335_v28 = vunpack.i.h.bf16 %v3333_v24  ;;  %v3334_v29 = vunpack.i.l.bf16 %v3333_v24 }
 0x846   : > { %v2106_v19 = vsel %vm2104_vm6, %v2103_v50, %v3335_v28  ;;  %v2105_v26 = vsel %vm2104_vm6, %v2102_v51, %v3334_v29 }
 0x847   : > { %v2107_v30 = vpack.c.bf16 %v2106_v19, %v2105_v26 }
 0x849   : > { %3115 = vmatmul.mubr.msk.bf16.vlgmr.msra.gmra.mrb[32].mxu1 %vm1072_vm2, %v2107_v30 }
 0x84a   : > { %3134 = vmatprep.mubr.msk.bf16.mxu1 %vm3876_vm1, %v3875_v31  ;;  %3127 = vmatpush3.bf16.msra.mxu1 %v3342_v11 }
 0x84b   : > { %3128 = vmatprep.subr.bf16.mxu1 %v3875_v31 }
 0x84e   : > { %3129 = vmatpush3.bf16.msra.mxu1 %v3343_v12 }
 0x84f   : > { %3130 = vmatprep.subr.bf16.mxu1 %v3875_v31 }
 0x852   : > { %3131 = vmatpush3.bf16.msra.mxu1 %v3344_v13 }
 0x853   : > { %3132 = vmatprep.subr.bf16.mxu1 %v3875_v31 }
 0x856   : > { %3133 = vmatpush3.bf16.msra.mxu1 %v3345_v14  ;;  %v3390_v14 = vld [vmem:[%s4872_s4] sm:$0xff] (!%p2937_p2)  }
 0x91c   : > { %v2168_v35 = vpop.f32.mrb[32].mxu1 }
 0x91d   : > { %v2169_v36 = vadd.f32 %v2919_v32, %v2168_v35  ;;  %v3116_v37 = vpop.f32.mrb[33].mxu1 }
 0x91e   : > { %v2171_v40 = vpop.f32.mrb[34].mxu1 }
 0x91f   : > { %v2172_v41 = vadd.f32 %v2919_v32, %v2171_v40  ;;  %v3117_v42 = vpop.f32.mrb[35].mxu1  ;;  %v2175_v59 = vadd.f32 %v2169_v36, %v4453_v33 }
 0x920   : > { %v2929_v42 = vld [vmem:[%s4869_s20] ss:$0 sm:$0xff] }
 0x921   : > { %v2179_v43 = vsel %vm1072_vm2, %v2175_v59, 0.0  ;;  %v2176_v38 = vadd.f32 %v2172_v41, %v4455_v34  ;;  %v3340_v34 = vld [vmem:[%s4432_s5] sm:$0xff]   ;;  %s4867_s5 = scalar_lea.vmem [#allocation14], %s4399_s26 }
 0x922   : > { %2180 = vadd.xlane.f32.xlu0 %v2179_v43  ;;  %3119 = vmatpush3.bf16.msra.mxu0 %v3340_v34  ;;  %v2924_v6 = vld [vmem:[%s4867_s5] ss:$0 sm:$0xff] }
 0x923   : > { %v2182_v39 = vsel %vm1072_vm2, %v2176_v38, 0.0  ;;  %3120 = vmatprep.subr.bf16.mxu0 %v3875_v31 }
 0x924   : > { %2183 = vadd.xlane.f32.xlu1 %v2182_v39 }
 0x926   : > { %3121 = vmatpush3.bf16.msra.mxu0 %v3341_v56 }
 0x9af   : > { %v2181_v44 = vpop.xlane.xlu0 %2180 }
 0x9b0   : > { %v2186_v45 = vmul.f32 0.03125, %v2181_v44 }
 0x9b1   : > { %v2184_v46 = vpop.xlane.xlu1 %2183 }
 0x9b2   : > { %v2188_v47 = vsub.f32 %v2175_v59, %v2186_v45  ;;  %v2187_v48 = vmul.f32 0.03125, %v2184_v46 }
 0x9b4   : > { %v2189_v49 = vsub.f32 %v2176_v38, %v2187_v48  ;;  %v2190_v52 = vmul.f32 %v2188_v47, %v2188_v47 }
 0x9b6   : > { %v2192_v53 = vsel %vm1072_vm2, %v2190_v52, 0.0  ;;  %v2191_v33 = vmul.f32 %v2189_v49, %v2189_v49 }
 0x9b7   : > { %2193 = vadd.xlane.f32.xlu0 %v2192_v53 }
 0x9b8   : > { %v2195_v55 = vsel %vm1072_vm2, %v2191_v33, 0.0 }
 0x9bb   : > { %2196 = vadd.xlane.f32.xlu0 %v2195_v55 }
 0xa44   : > { %v2194_v57 = vpop.xlane.xlu0 %2193 }
 0xa45   : > { %v2198_v60 = vmul.f32 0.03125, %v2194_v57 }
 0xa47   : > { %v2200_v61 = vadd.f32 1e-05, %v2198_v60 }
 0xa48   : > { %v2197_v62 = vpop.xlane.xlu0 %2196 }
 0xa49   : > { %3378 = vrsqrt.f32 %v2200_v61  ;;  %v2199_v1 = vmul.f32 0.03125, %v2197_v62 }
 0xa4b   : > { %v2201_v58 = vadd.f32 1e-05, %v2199_v1 }
 0xa4d   : > { %3380 = vrsqrt.f32 %v2201_v58 }
 0xa53   : > { %v3379_v54 = vpop.eup %3378 }
 0xa54   : > { %v2204_v63 = vmul.f32 %v3379_v54, %v2188_v47 }
 0xa56   : > { %v2212_v4 = vmul.f32 %v2923_v2, %v2204_v63 }
 0xa57   : > { %v3381_v3 = vpop.eup %3380 }
 0xa58   : > { %v2205_v5 = vmul.f32 %v3381_v3, %v2189_v49  ;;  %v2220_v8 = vadd.f32 %v2924_v6, %v2212_v4 }
 0xa5a   : > { %v2213_v7 = vmul.f32 %v2923_v2, %v2205_v5  ;;  %v2935_v5 = vld [vmem:[%s4870_s3] ss:$0 sm:$0xff] }
 0xa5c   : > { %v2221_v9 = vadd.f32 %v2924_v6, %v2213_v7 }
 0xa5e   : > { %v2222_v10 = vpack.c.bf16 %v2221_v9, %v2220_v8 }
 0xa60   : > { %3123 = vmatmul.mubr.msk.bf16.vlgmr.msra.gmra.mrb[36].mxu0 %vm1072_vm2, %v2222_v10 }
 0xb33   : > { %v2283_v16 = vpop.f32.mrb[36].mxu0 }
 0xb34   : > { %v2284_v17 = vadd.f32 %v2925_v15, %v2283_v16  ;;  %v3124_v18 = vpop.f32.mrb[37].mxu0 }
 0xb35   : > { %v2286_v20 = vpop.f32.mrb[38].mxu0  ;;  %v3391_v18 = vld [vmem:[%s4872_s4 + $0x8] sm:$0xff] (!%p2937_p2)  }
 0xb36   : > { %v2292_v21 = vmul.f32 0.044715, %v2284_v17  ;;  %v2287_v22 = vadd.f32 %v2925_v15, %v2286_v20  ;;  %v3125_v0 = vpop.f32.mrb[39].mxu0  ;;  %v2290_v32 = vmul.f32 0.5, %v2284_v17 }
 0xb38   : > { %v2294_v23 = vmul.f32 %v2292_v21, %v2284_v17  ;;  %v2293_v24 = vmul.f32 0.044715, %v2287_v22  ;;  %v2291_v35 = vmul.f32 0.5, %v2287_v22 }
 0xb3a   : > { %v2296_v25 = vmul.f32 %v2294_v23, %v2284_v17  ;;  %v2295_v27 = vmul.f32 %v2293_v24, %v2287_v22  ;;  %v3392_v24 = vld [vmem:[%s4873_s9] sm:$0xff] (!%p2937_p2)  }
 0xb3c   : > { %v2298_v28 = vadd.f32 %v2296_v25, %v2284_v17  ;;  %v2297_v29 = vmul.f32 %v2295_v27, %v2287_v22  ;;  %v3885_v17 = vmov (!%p2937_p2), 0.0   ;;  %v3393_v25 = vld [vmem:[%s4873_s9 + $0x8] sm:$0xff] (!%p2937_p2)   ;;  %v2938_v27 = vld [vmem:[#allocation19] ss:$0 sm:$0xff] (!%p2937_p2) }
 0xb3d   : > { %3138 = vmatprep.subr.bf16.mxu0 (!%p2937_p2), %v3885_v17  ;;  %3146 = vmatprep.subr.bf16.mxu1 (!%p2937_p2), %v3885_v17 }
 0xb3e   : > { %v2300_v50 = vmul.f32 0.7978845, %v2298_v28  ;;  %v2299_v51 = vadd.f32 %v2297_v29, %v2287_v22  ;;  %3139 = vmatpush3.bf16.msra.mxu0 (!%p2937_p2), %v3390_v14  ;;  %3142 = vmatprep.mubr.msk.bf16.mxu0 (!%p2937_p2), %vm3886_vm8, %v3885_v17 }
 0xb3f   : > { %3140 = vmatprep.subr.bf16.mxu0 (!%p2937_p2), %v3885_v17 }
 0xb40   : > { %3382 = vtanh.f32 %v2300_v50  ;;  %v2301_v31 = vmul.f32 0.7978845, %v2299_v51 }
 0xb42   : > { %3384 = vtanh.f32 %v2301_v31  ;;  %3141 = vmatpush3.bf16.msra.mxu0 (!%p2937_p2), %v3391_v18 }
 0xb4a   : > { %v3383_v19 = vpop.eup %3382 }
 0xb4b   : > { %v2304_v26 = vadd.f32 1.0, %v3383_v19 }
 0xb4c   : > { %v3385_v30 = vpop.eup %3384 }
 0xb4d   : > { %v2305_v36 = vadd.f32 1.0, %v3385_v30  ;;  %v2306_v37 = vmul.f32 %v2304_v26, %v2290_v32  ;;  %v2942_v30 = vld [vmem:[%s4874_s1] ss:$0 sm:$0xff] (!%p2937_p2) }
 0xb4f   : > { %v2307_v40 = vmul.f32 %v2305_v36, %v2291_v35 }
 0xb51   : > { %v2308_v41 = vpack.c.bf16 %v2307_v40, %v2306_v37 }
 0xb53   : > { %3135 = vmatmul.mubr.msk.bf16.vlgmr.msra.gmra.mrb[36].mxu1 %vm2348_vm7, %v2308_v41 }
 0xb54   : > { %3150 = vmatprep.mubr.msk.bf16.mxu1 (!%p2937_p2), %vm3886_vm8, %v3885_v17  ;;  %3147 = vmatpush3.bf16.msra.mxu1 (!%p2937_p2), %v3392_v24 }
 0xb55   : > { %3148 = vmatprep.subr.bf16.mxu1 (!%p2937_p2), %v3885_v17 }
 0xb58   : > { %3149 = vmatpush3.bf16.msra.mxu1 (!%p2937_p2), %v3393_v25 }
 0xc26   : > { %v2386_v59 = vpop.f32.mrb[36].mxu1 }
 0xc27   : > { %v2387_v43 = vadd.f32 %v2929_v42, %v2386_v59  ;;  %v3136_v38 = vpop.f32.mrb[37].mxu1 }
 0xc28   : > { %v2389_v39 = vpop.f32.mrb[38].mxu1 }
 0xc29   : > { %v2390_v44 = vadd.f32 %v2929_v42, %v2389_v39  ;;  %v3137_v45 = vpop.f32.mrb[39].mxu1  ;;  %v2393_v46 = vadd.f32 %v2387_v43, %v2220_v8  ;;  %v2936_v8 = vld [vmem:[%s4871_s30] ss:$0 sm:$0xff] }
 0xc2b   : > { %v2397_v47 = vsel %vm1072_vm2, %v2393_v46, 0.0  ;;  %v2394_v48 = vadd.f32 %v2390_v44, %v2221_v9 }
 0xc2c   : > { %2398 = vadd.xlane.f32.xlu1 %v2397_v47 }
 0xc2d   : > { %v2400_v49 = vsel %vm1072_vm2, %v2394_v48, 0.0 }
 0xc2e   : > { %2401 = vadd.xlane.f32.xlu0 %v2400_v49 }
 0xcb9   : > { %v2399_v52 = vpop.xlane.xlu1 %2398 }
 0xcba   : > { %v2403_v53 = vmul.f32 0.03125, %v2399_v52 }
 0xcbb   : > { %v2402_v33 = vpop.xlane.xlu0 %2401 }
 0xcbc   : > { %v2405_v55 = vsub.f32 %v2393_v46, %v2403_v53  ;;  %v2404_v34 = vmul.f32 0.03125, %v2402_v33 }
 0xcbe   : > { %v2406_v56 = vsub.f32 %v2394_v48, %v2404_v34  ;;  %v2407_v57 = vmul.f32 %v2405_v55, %v2405_v55 }
 0xcc0   : > { %v2409_v60 = vsel %vm1072_vm2, %v2407_v57, 0.0  ;;  %v2408_v61 = vmul.f32 %v2406_v56, %v2406_v56 }
 0xcc1   : > { %2410 = vadd.xlane.f32.xlu1 %v2409_v60 }
 0xcc2   : > { %v2412_v62 = vsel %vm1072_vm2, %v2408_v61, 0.0 }
 0xcc3   : > { %2413 = vadd.xlane.f32.xlu0 %v2412_v62 }
 0xd4e   : > { %v2411_v1 = vpop.xlane.xlu1 %2410 }
 0xd4f   : > { %v2415_v58 = vmul.f32 0.03125, %v2411_v1 }
 0xd50   : > { %v2414_v54 = vpop.xlane.xlu0 %2413 }
 0xd51   : > { %v2417_v63 = vadd.f32 1e-05, %v2415_v58  ;;  %v2416_v2 = vmul.f32 0.03125, %v2414_v54 }
 0xd53   : > { %3386 = vrsqrt.f32 %v2417_v63  ;;  %v2418_v3 = vadd.f32 1e-05, %v2416_v2 }
 0xd55   : > { %3388 = vrsqrt.f32 %v2418_v3 }
 0xd5d   : > { %v3387_v4 = vpop.eup %3386 }
 0xd5e   : > { %v2421_v6 = vmul.f32 %v3387_v4, %v2405_v55 }
 0xd5f   : > { %v3389_v7 = vpop.eup %3388 }
 0xd60   : > { %v2429_v9 = vmul.f32 %v2935_v5, %v2421_v6  ;;  %v2422_v10 = vmul.f32 %v3389_v7, %v2406_v56  ;;  %2444 = sbr.rel (%p2937_p2) target bundleno = 3881 (0xf29), region = 160 }
 0xd62   : > { %v2437_v11 = vadd.f32 %v2936_v8, %v2429_v9  ;;  %v2430_v12 = vmul.f32 %v2935_v5, %v2422_v10 }
 0xd64   : > { %2439 = vst.msk [vmem:[#allocation2] sm:$0xff] %vm1072_vm2, %v2437_v11  ;;  %v2438_v13 = vadd.f32 %v2936_v8, %v2430_v12  ;;  %v2445_v15 = vpack.c.bf16 (!%p2937_p2), %v2437_v11, %v2437_v11 }
 0xd66   : > { %2440 = vst.msk [vmem:[#allocation2 + $0x8] sm:$0xff] %vm1072_vm2, %v2438_v13  ;;  %v2446_v16 = vpack.c.bf16 (!%p2937_p2), %v2438_v13, %v2438_v13  ;;  %v2460_v20 = vunpack.c.l.b16 (!%p2937_p2), %v2445_v15 }
 0xd68   : > { %v2461_v21 = vunpack.c.l.b16 %v2446_v16 }
 0xd6a   : > { %v2462_v22 = vrot.slane %v2461_v21, 7 }
 0xd6c   : > { %v2464_v0 = vsel %vm2463_vm9, %v2462_v22, %v2460_v20 }
 0xd6d   : > { %v2465_v23 = vpack.c.b16 %v2464_v0, %v2464_v0 }
 0xd6f   : > { %3143 = vmatmul.mubr.msk.bf16.vlgmr.msra.gmra.mrb[0].mxu0 %vm1072_vm2, %v2465_v23 }
 0xe42   : > { %v2515_v28 = vpop.f32.mrb[0].mxu0 }
 0xe43   : > { %v2516_v29 = vadd.f32 %v2938_v27, %v2515_v28  ;;  %v3144_v50 = vpop.f32.mrb[1].mxu0 }
 0xe44   : > { %v2518_v51 = vpop.f32.mrb[2].mxu0 }
 0xe45   : > { %3394 = vtanh.f32 %v2516_v29  ;;  %v3145_v31 = vpop.f32.mrb[3].mxu0 }
 0xe4f   : > { %v3395_v19 = vpop.eup %3394 }
 0xe50   : > { %v2522_v26 = vpack.c.bf16 %v3395_v19, %v3395_v19 }
 0xe52   : > { %3151 = vmatmul.mubr.msk.bf16.vlgmr.msra.gmra.mrb[0].mxu1 %vm1072_vm2, %v2522_v26 }
 0xf25   : > { %v2583_v32 = vpop.f32.mrb[0].mxu1 }
 0xf26   : > { %v2584_v35 = vadd.f32 %v2942_v30, %v2583_v32  ;;  %v3152_v36 = vpop.f32.mrb[1].mxu1 }
 0xf27   : > { %v2586_v37 = vpop.f32.mrb[2].mxu1 }
 0xf28   : > { %2589 = vst [vmem:[#allocation20] sm:$0x3] %v2584_v35  ;;  %v3153_v40 = vpop.f32.mrb[3].mxu1 }
 0xf29 PF: > { %p3246_p4 = scmp.eq.s32.totalorder %s4012_s2, 1  ;;  %s3887_s19 = smov [#allocation20]  }
 0xf2a   : > { %s2597_s6 = sshll.u32 %s3887_s19, 4  ;;  %s2598_s6 = int_to_ptr.vmem [resolvable:$true] %s2597_s6 }
 0xf2b   : > { %s3776_s12 = scalar_lea.vmem %s2598_s6, 32  ;;  %p3783_p12 = scmp.lt.s32.totalorder %s2598_s6, %s2598_s6 }
 0xf2c   : > { %p3777_p5 = scmp.ne.s32.totalorder %s2598_s6, %s3776_s12  ;;  %p3784_p10 = scmp.lt.s32.totalorder %s3776_s12, %s3776_s12 }
 0xf2e   : > { %p3778_p6 = pnand %p3777_p5, %p3246_p4  ;;  %p3785_p0 = por %p3784_p10, %p3783_p12 }
 0xf30   : > { %p3779_p13 = pneg %p3778_p6 }
 0xf32   : > { %p3786_p11 = pnand %p3785_p0, %p3779_p13 }
 0xf34   : > { %3789 = shalt.err (!%p3786_p11)
}
 0xf35   : > { %s4875_s20 = sld [smem:[#allocation46_spill]] }
 0xf3b   : > { %s3790_s3 = scalar_lea.hbm %s4875_s20, 32 }
 0xf3c   : > { %p3791_p8 = scmp.ne.s32.totalorder %s4875_s20, %s3790_s3  ;;  %p3796_p9 = scmp.lt.u32.totalorder %s3790_s3, %s4875_s20 }
 0xf3e   : > { %p3792_p3 = pnand %p3791_p8, %p3246_p4 }
 0xf40   : > { %p3793_p1 = pneg %p3792_p3 }
 0xf42   : > { %p3798_p7 = pnand %p3796_p9, %p3793_p1 }
 0xf44   : > { %3801 = shalt.err (!%p3798_p7)
}
 0xf45   : > { %3191 = dma.vmem_to_hbm [thread:$0]  (%p3246_p4), %s2598_s6, 32, %s4875_s20, [#allocation5]  }
 0xf46   : > { %3839 = dma.done.wait (%p3246_p4), [#allocation5], 32  }
 0xf47   : > { %3841 = vsyncadd (%p3246_p4), [#allocation5], 4294967264 }
 0xf48 PF: > { %s4876_s24 = sld [smem:[#allocation28_spill]]  ;;  %s4877_s27 = sld [smem:[#allocation27_spill]] }
 0xf49   : > { %s4878_s23 = sld [smem:[#allocation29_spill]]  ;;  %s4879_s1 = smov %s3848_s22 }
 0xf4e   : > { %p31_p2 = scmp.ge.s32.totalorder %s4876_s24, 4   ;;  %s4880_s22 = smov %s4877_s27 }
 0xf50   :  { %33 = sbr.rel (!%p31_p2) target bundleno = 22 (0x16), region = 253 }
 0xf57   :  { %2610 = vsyncpa [#allocation4], 1 }
 0xf58   :  { %2612 = vsyncpa [#allocation4 + $0x1], 1 }
 0xf59   :  { %2613 = vsyncpa [#allocation7], 1 }
 0xf5a   :  { %2614 = vsyncpa [#allocation10], 1 }
 0xf5b   :  { %2615 = vsyncpa [#allocation5], 1 }
 0xf5c   :  { %2617 = vsyncpa [#allocation5 + $0x1], 1 }

</bundles_post_ra>
